<compile_context>
chip_gen: v7x
topology: tpu7x:2x2x1
jax: 0.10.0
libtpu: 0.0.40
codegen_flags: <defaults>
</compile_context>

<pallas_src>
import functools

import jax
import jax.numpy as jnp
from jax import lax
from jax.experimental import pallas as pl
from jax.experimental.pallas import tpu as pltpu


MM_DTYPE = jnp.bfloat16  # MXU operand dtype (accumulation stays f32)


# ----------------------------- kernel helpers --------------------------------


def _layer_norm(x, gamma, beta, eps=1e-5):
    # Single-pass LN: E[x] and E[x^2] from the same read of x.
    mean = jnp.mean(x, axis=-1, keepdims=True)
    mean_sq = jnp.mean(x * x, axis=-1, keepdims=True)
    var = mean_sq - mean * mean
    return (x - mean) * lax.rsqrt(var + eps) * gamma + beta


def _mm(a, b):
    """MXU matmul, bf16 operands, f32 accumulation."""
    return jnp.dot(a.astype(MM_DTYPE), b.astype(MM_DTYPE),
                   preferred_element_type=jnp.float32)


def _mm_nt(a, b):
    """a @ b.T without a materialized transpose (contract last dims)."""
    return lax.dot_general(a.astype(MM_DTYPE), b.astype(MM_DTYPE),
                           (((1,), (1,)), ((), ())),
                           preferred_element_type=jnp.float32)


# ----------------------------- kernel ----------------------------------------


def encoder_kernel(
    x0_ref,    # (bb_rows, D) f32     layer-0 input (emb + pos enc)
    mask_ref,  # (block_b, 1, S) f32  1.0 where key token == PAD
    wqkv_ref,  # (1, D, H*(2*d_k+d_v)) bf16  fused q|k|v (q pre-scaled)
    wo_ref,    # (1, H*d_v, D) bf16
    ln1g_ref,  # (1, 1, D) f32
    ln1b_ref,  # (1, 1, D) f32
    w1_ref,    # (1, D, d_ff) bf16
    w2_ref,    # (1, d_ff, D) bf16
    ln2g_ref,  # (1, 1, D) f32
    ln2b_ref,  # (1, 1, D) f32
    out_ref,   # (bb_rows, D) f32     resident across the layer grid axis
    *rest,     # [attn_ref] + scratch refs
    block_b, seq_len, n_heads, d_k, d_v, ff_block, with_attn,
):
    if with_attn:
        attn_ref, qkv_sc, ctx_sc, ff_sc = rest
    else:
        attn_ref = None
        qkv_sc, ctx_sc, ff_sc = rest

    layer = pl.program_id(1)

    # Seed the resident activation block with the embedded inputs at layer 0.
    @pl.when(layer == 0)
    def _():
        out_ref[...] = x0_ref[...]

    x = out_ref[...]                       # (bb_rows, D) f32
    S, H = seq_len, n_heads
    q_off, k_off, v_off = 0, H * d_k, 2 * H * d_k

    # ---- fused QKV projection: one wide MXU matmul --------------------------
    # (1/sqrt(d_k) is pre-folded into the q columns of wqkv at pack time.)
    qkv_sc[...] = _mm(x, wqkv_ref[0])      # (bb_rows, H*(2*d_k+d_v)) f32

    # ---- attention: static loops, all intermediates live in VMEM scratch ----
    for b in range(block_b):
        rb = slice(b * S, (b + 1) * S)
        # additive pad bias, computed once per batch row (mask is 0/1)
        bias_b = mask_ref[b] * jnp.float32(-1e9)            # (1, S)
        for h in range(H):
            qh = qkv_sc[rb, q_off + h * d_k: q_off + (h + 1) * d_k]  # (S,d_k)
            kh = qkv_sc[rb, k_off + h * d_k: k_off + (h + 1) * d_k]  # (S,d_k)
            vh = qkv_sc[rb, v_off + h * d_v: v_off + (h + 1) * d_v]  # (S,d_v)

            scores = _mm_nt(qh, kh) + bias_b                         # (S, S)

            # softmax (f32, EUP approx reciprocal for the denominator)
            m = jnp.max(scores, axis=-1, keepdims=True)
            e = jnp.exp(scores - m)
            p = e * pl.reciprocal(jnp.sum(e, axis=-1, keepdims=True),
                                  approx=True)
            if with_attn:
                attn_ref[0, b, h] = p.astype(attn_ref.dtype)

            ctx = _mm(p, vh)                                         # (S, d_v)
            ctx_sc[rb, h * d_v:(h + 1) * d_v] = ctx

    # ---- fused output projection: single matmul with K = H*d_v --------------
    attn_out = _mm(ctx_sc[...], wo_ref[0])                 # (bb_rows, D)

    # ---- Add & LayerNorm (post-attention) ------------------------------------
    y = _layer_norm(attn_out + x, ln1g_ref[0], ln1b_ref[0])

    # ---- position-wise feed-forward, K-tiled over d_ff -----------------------
    y_mm = y.astype(MM_DTYPE)
    d_ff = w1_ref.shape[-1]
    n_chunks = d_ff // ff_block
    ff_sc[...] = jnp.zeros_like(ff_sc)
    for c in range(n_chunks):
        cs = slice(c * ff_block, (c + 1) * ff_block)
        h1 = jnp.maximum(
            jnp.dot(y_mm, w1_ref[0, :, cs],
                    preferred_element_type=jnp.float32), 0.0)
        ff_sc[...] += jnp.dot(h1.astype(MM_DTYPE), w2_ref[0, cs, :],
                              preferred_element_type=jnp.float32)

    # ---- Add & LayerNorm (post-FFN) -> carried to the next layer -------------
    out_ref[...] = _layer_norm(ff_sc[...] + y, ln2g_ref[0], ln2b_ref[0])


# ----------------------------- wrapper ----------------------------------------


def sinusoidal_pos_encoding(seq_len, d_model):
    assert d_model % 2 == 0, "sinusoidal PE requires even d_model"
    pos = jnp.arange(seq_len, dtype=jnp.float32)[:, None]
    div = jnp.exp(jnp.arange(0, d_model, 2, dtype=jnp.float32)
                  * (-jnp.log(10000.0) / d_model))
    pe = jnp.zeros((seq_len, d_model), jnp.float32)
    pe = pe.at[:, 0::2].set(jnp.sin(pos * div))
    pe = pe.at[:, 1::2].set(jnp.cos(pos * div))
    return pe


def init_params(key, src_vocab_size, d_model, d_k, d_v, n_heads, d_ff,
                n_layers):
    keys = jax.random.split(key, 1 + 5 * n_layers)
    params = {
        "emb": (jax.random.normal(keys[0], (src_vocab_size, d_model),
                                  jnp.float32) * 0.1),
        "layers": [],
    }
    for l in range(n_layers):
        k = keys[1 + 5 * l: 1 + 5 * (l + 1)]
        layer = {
            "wq": jax.random.normal(k[0], (d_model, n_heads * d_k)) * 0.1,
            "wk": jax.random.normal(k[1], (d_model, n_heads * d_k)) * 0.1,
            "wv": jax.random.normal(k[2], (d_model, n_heads * d_v)) * 0.1,
            "wo": jax.random.normal(k[3], (n_heads * d_v, d_model)) * 0.1,
            "w1": jax.random.normal(k[4], (d_model, d_ff)) * 0.1,
            "w2": jax.random.normal(
                jax.random.fold_in(k[4], 1), (d_ff, d_model)) * 0.1,
            # fresh nn.LayerNorm(d_model) in the reference -> gamma=1, beta=0
            "ln1_g": jnp.ones((1, d_model), jnp.float32),
            "ln1_b": jnp.zeros((1, d_model), jnp.float32),
            "ln2_g": jnp.ones((1, d_model), jnp.float32),
            "ln2_b": jnp.zeros((1, d_model), jnp.float32),
        }
        params["layers"].append(
            {kk: vv.astype(jnp.float32) for kk, vv in layer.items()})
    return params


def pack_layer_params(layers, n_heads, d_k, d_v):
    """Stack per-layer weights along a leading layer axis; fuse q|k|v with the
    1/sqrt(d_k) scale folded into q; keep wo as (H*d_v, D); bf16 matmul weights."""
    stack = lambda name: jnp.stack([lp[name] for lp in layers])
    scale = 1.0 / (float(d_k) ** 0.5)
    wqkv = jnp.concatenate([stack("wq") * scale, stack("wk"), stack("wv")],
                           axis=-1).astype(MM_DTYPE)   # (L, D, H*(2dk+dv))
    return {
        "wqkv": wqkv,
        "wo": stack("wo").astype(MM_DTYPE),            # (L, H*d_v, D)
        "w1": stack("w1").astype(MM_DTYPE),
        "w2": stack("w2").astype(MM_DTYPE),
        "ln1_g": stack("ln1_g"), "ln1_b": stack("ln1_b"),
        "ln2_g": stack("ln2_g"), "ln2_b": stack("ln2_b"),
    }


def _pick_batch_block(B, S, target_rows=512):
    """Largest divisor of B such that bb_rows stays modest AND grid[0] >= 2
    (keeps both v7x TensorCores busy via the 'parallel' axis)."""
    best = 1
    for bb in range(1, B + 1):
        if B % bb:
            continue
        rows_ok = (bb * S <= target_rows) or bb == 1
        cores_ok = (B // bb >= 2) or (B == 1)
        if rows_ok and cores_ok:
            best = bb
    return best


def _default_vmem_limit_bytes():
    try:
        info = pltpu.get_tpu_info()
        cap = getattr(info, "vmem_capacity_bytes", None)
        if cap:
            return int(cap * 0.85)   # ~108 MiB on v5e/v6e, ~54 MiB on v7x
    except Exception:
        pass
    return 48 * 1024 * 1024          # safe fallback (fits v7x's 64 MiB)


def encoder_forward(enc_inputs, params, *, d_model, d_k, d_v, n_heads,
                    batch_block=None, ff_block=512, return_attn=True,
                    attn_dtype=jnp.bfloat16, vmem_limit_bytes=None):
    """enc_inputs: (B, S) int32 token ids.
    Returns (enc_outputs (B,S,D), [attn (B,H,S,S) per layer])."""
    B, S = enc_inputs.shape
    packed = params["packed"]
    n_layers = packed["wqkv"].shape[0]
    d_ff = packed["w1"].shape[-1]
    H = n_heads

    if batch_block is None:
        batch_block = _pick_batch_block(B, S)
    assert B % batch_block == 0
    bb_rows = batch_block * S
    if d_ff % ff_block != 0:
        ff_block = d_ff
    if vmem_limit_bytes is None:
        vmem_limit_bytes = _default_vmem_limit_bytes()

    # embedding + positional encoding (cheap glue in plain JAX)
    x = params["emb"][enc_inputs] + sinusoidal_pos_encoding(S, d_model)[None]
    # TODO(synk): PositionalEncoding uses dropout(p=0.1) in training; omitted (eval).
    x_flat = x.reshape(B * S, d_model).astype(jnp.float32)

    # key-only pad mask, O(S) per batch (broadcast to (S,S) inside the kernel)
    key_mask = (enc_inputs == 0).astype(jnp.float32)[:, None, :]  # (B, 1, S)

    kernel = functools.partial(
        encoder_kernel, block_b=batch_block, seq_len=S, n_heads=H,
        d_k=d_k, d_v=d_v, ff_block=ff_block, with_attn=return_attn)

    def per_layer_spec(shape):
        zeros = (0,) * (len(shape) - 1)
        return pl.BlockSpec((1,) + tuple(shape[1:]),
                            lambda bb, l: (l,) + zeros)

    out_specs = [pl.BlockSpec((bb_rows, d_model), lambda bb, l: (bb, 0))]
    out_shape = [jax.ShapeDtypeStruct((B * S, d_model), jnp.float32)]
    if return_attn:
        out_specs.append(pl.BlockSpec((1, batch_block, H, S, S),
                                      lambda bb, l: (l, bb, 0, 0, 0)))
        out_shape.append(
            jax.ShapeDtypeStruct((n_layers, B, H, S, S), attn_dtype))

    scratch_shapes = [
        pltpu.VMEM((bb_rows, H * (2 * d_k + d_v)), jnp.float32),  # fused qkv
        pltpu.VMEM((bb_rows, H * d_v), jnp.float32),              # per-head ctx
        pltpu.VMEM((bb_rows, d_model), jnp.float32),              # ffn acc
    ]

    results = pl.pallas_call(
        kernel,
        grid=(B // batch_block, n_layers),
        in_specs=[
            pl.BlockSpec((bb_rows, d_model), lambda bb, l: (bb, 0)),
            pl.BlockSpec((batch_block, 1, S), lambda bb, l: (bb, 0, 0)),
            per_layer_spec(packed["wqkv"].shape),
            per_layer_spec(packed["wo"].shape),
            per_layer_spec(packed["ln1_g"].shape),
            per_layer_spec(packed["ln1_b"].shape),
            per_layer_spec(packed["w1"].shape),
            per_layer_spec(packed["w2"].shape),
            per_layer_spec(packed["ln2_g"].shape),
            per_layer_spec(packed["ln2_b"].shape),
        ],
        out_specs=out_specs,
        out_shape=out_shape,
        scratch_shapes=scratch_shapes,
        compiler_params=pltpu.CompilerParams(
            dimension_semantics=("parallel", "arbitrary"),
            vmem_limit_bytes=vmem_limit_bytes),
    )(x_flat, key_mask,
      packed["wqkv"], packed["wo"],
      packed["ln1_g"], packed["ln1_b"],
      packed["w1"], packed["w2"],
      packed["ln2_g"], packed["ln2_b"])

    if return_attn:
        out, attn = results
        enc_self_attns = [attn[l] for l in range(n_layers)]
    else:
        out = results[0]
        enc_self_attns = []
    return out.reshape(B, S, d_model), enc_self_attns


# ----------------------- pure-JAX reference (f32) ----------------------------


def encoder_reference(enc_inputs, params, *, d_model, d_k, d_v, n_heads):
    B, S = enc_inputs.shape
    H = n_heads
    x = params["emb"][enc_inputs] + sinusoidal_pos_encoding(S, d_model)[None]
    pad = (enc_inputs == 0)                                     # (B, S)
    mask = jnp.broadcast_to(pad[:, None, None, :], (B, H, S, S))
    outs_attn = []
    for lp in params["layers"]:
        q = (x @ lp["wq"]).reshape(B, S, H, d_k).transpose(0, 2, 1, 3)
        k = (x @ lp["wk"]).reshape(B, S, H, d_k).transpose(0, 2, 1, 3)
        v = (x @ lp["wv"]).reshape(B, S, H, d_v).transpose(0, 2, 1, 3)
        s = jnp.einsum("bhqd,bhkd->bhqk", q, k) / jnp.sqrt(jnp.float32(d_k))
        s = jnp.where(mask, -1e9, s)
        p = jax.nn.softmax(s, axis=-1)
        ctx = jnp.einsum("bhqk,bhkd->bhqd", p, v).transpose(0, 2, 1, 3)
        ctx = ctx.reshape(B, S, H * d_v)
        attn_out = ctx @ lp["wo"]
        y = _layer_norm(attn_out + x, lp["ln1_g"], lp["ln1_b"])
        ff = jnp.maximum(y @ lp["w1"], 0.0) @ lp["w2"]
        x = _layer_norm(ff + y, lp["ln2_g"], lp["ln2_b"])
        outs_attn.append(p)
    return x, outs_attn


# ----------------------------- main ------------------------------------------


if __name__ == "__main__":
    src_vocab_size = 16
    d_model = 32
    d_k = d_v = 8
    n_heads = 4
    d_ff = 64
    n_layers = 2
    B, S = 2, 8

    key = jax.random.PRNGKey(0)
    pkey, ikey = jax.random.split(key)

    params = init_params(pkey, src_vocab_size, d_model, d_k, d_v, n_heads,
                         d_ff, n_layers)
    params["packed"] = pack_layer_params(params["layers"], n_heads, d_k, d_v)

    enc_inputs = jax.random.randint(ikey, (B, S), 1, src_vocab_size,
                                    dtype=jnp.int32)
    # put some PAD (0) tokens at the tail so the attention mask is exercised
    enc_inputs = enc_inputs.at[:, -2:].set(0)

    enc_outputs, enc_self_attns = encoder_forward(
        enc_inputs, params, d_model=d_model, d_k=d_k, d_v=d_v, n_heads=n_heads)

    jax.block_until_ready(enc_outputs)
    for a in enc_self_attns:
        jax.block_until_ready(a)

    assert enc_outputs.shape == (B, S, d_model)
    assert len(enc_self_attns) == n_layers
    assert all(a.shape == (B, n_heads, S, S) for a in enc_self_attns)
    assert bool(jnp.all(jnp.isfinite(enc_outputs)))

    # loose tolerance: bf16 MXU operands, bf16 attn output, approx reciprocal
    ref_out, ref_attn = encoder_reference(
        enc_inputs, params, d_model=d_model, d_k=d_k, d_v=d_v, n_heads=n_heads)
    assert bool(jnp.allclose(enc_outputs, ref_out, atol=1e-1, rtol=1e-1))
    assert bool(jnp.allclose(enc_self_attns[0].astype(jnp.float32),
                             ref_attn[0], atol=5e-2, rtol=5e-2))

    print("KERNEL_OK")
</pallas_src>

<mosaic_0001>
module attributes {stable_mosaic.version = 11 : i64} {
  func.func @encoder_kernel(%arg0: i32, %arg1: i32, %arg2: memref<8x32xf32, #tpu.memory_space<vmem>>, %arg3: memref<1x1x8xf32, #tpu.memory_space<vmem>>, %arg4: memref<1x32x96xbf16, #tpu.memory_space<vmem>>, %arg5: memref<1x32x32xbf16, #tpu.memory_space<vmem>>, %arg6: memref<1x1x32xf32, #tpu.memory_space<vmem>>, %arg7: memref<1x1x32xf32, #tpu.memory_space<vmem>>, %arg8: memref<1x32x64xbf16, #tpu.memory_space<vmem>>, %arg9: memref<1x64x32xbf16, #tpu.memory_space<vmem>>, %arg10: memref<1x1x32xf32, #tpu.memory_space<vmem>>, %arg11: memref<1x1x32xf32, #tpu.memory_space<vmem>>, %arg12: memref<8x32xf32, #tpu.memory_space<vmem>>, %arg13: memref<1x1x4x8x8xbf16, #tpu.memory_space<vmem>>, %arg14: memref<8x96xf32, #tpu.memory_space<vmem>>, %arg15: memref<8x32xf32, #tpu.memory_space<vmem>>, %arg16: memref<8x32xf32, #tpu.memory_space<vmem>>) attributes {dimension_semantics = [#tpu.dimension_semantics<parallel>, #tpu.dimension_semantics<arbitrary>], iteration_bounds = array<i64: 2, 2>, scalar_prefetch = 0 : i64, scratch_operands = 3 : i64, tpu.core_type = #tpu.core_type<tc>, window_params = [{transform_indices = @transform_0, window_bounds = array<i64: 8, 32>}, {transform_indices = @transform_1, window_bounds = array<i64: 1, 1, 8>}, {transform_indices = @transform_2, window_bounds = array<i64: 1, 32, 96>}, {transform_indices = @transform_3, window_bounds = array<i64: 1, 32, 32>}, {transform_indices = @transform_4, window_bounds = array<i64: 1, 1, 32>}, {transform_indices = @transform_5, window_bounds = array<i64: 1, 1, 32>}, {transform_indices = @transform_6, window_bounds = array<i64: 1, 32, 64>}, {transform_indices = @transform_7, window_bounds = array<i64: 1, 64, 32>}, {transform_indices = @transform_8, window_bounds = array<i64: 1, 1, 32>}, {transform_indices = @transform_9, window_bounds = array<i64: 1, 1, 32>}, {transform_indices = @transform_10, window_bounds = array<i64: 8, 32>}, {transform_indices = @transform_11, window_bounds = array<i64: 1, 1, 4, 8, 8>}]} {
    %c0_i32 = arith.constant 0 : i32
    %0 = arith.cmpi eq, %arg1, %c0_i32 : i32
    %1 = arith.extui %0 : i1 to i32
    %c0_i32_0 = arith.constant 0 : i32
    %2 = arith.cmpi ne, %1, %c0_i32_0 : i32
    scf.if %2 {
      %c0_113 = arith.constant 0 : index
      %c0_114 = arith.constant 0 : index
      %193 = vector.load %arg2[%c0_113, %c0_114] : memref<8x32xf32, #tpu.memory_space<vmem>>, vector<8x32xf32>
      %c0_115 = arith.constant 0 : index
      %c0_116 = arith.constant 0 : index
      %194 = vector.load %arg12[%c0_115, %c0_116] : memref<8x32xf32, #tpu.memory_space<vmem>>, vector<8x32xf32>
      tpu.vector_store %arg12[%c0_115, %c0_116], %193 {strides = array<i32>} : memref<8x32xf32, #tpu.memory_space<vmem>>, vector<8x32xf32>,
    } else {
    }
    %c0 = arith.constant 0 : index
    %c0_1 = arith.constant 0 : index
    %3 = vector.load %arg12[%c0, %c0_1] : memref<8x32xf32, #tpu.memory_space<vmem>>, vector<8x32xf32>
    %c0_2 = arith.constant 0 : index
    %c0_3 = arith.constant 0 : index
    %c0_4 = arith.constant 0 : index
    %4 = vector.load %arg4[%c0_2, %c0_3, %c0_4] : memref<1x32x96xbf16, #tpu.memory_space<vmem>>, vector<1x32x96xbf16>
    %5 = vector.shape_cast %4 : vector<1x32x96xbf16> to vector<32x96xbf16>
    %6 = arith.truncf %3 : vector<8x32xf32> to vector<8x32xbf16>
    %cst = arith.constant dense<0.000000e+00> : vector<8x96xf32>
    %7 = tpu.matmul %6, %5, %cst {dimension_numbers = #tpu.dot_dimension_numbers<[1], [0], [0], [1], [0, 0, 1, 1], [], []>} : vector<8x32xbf16>, vector<32x96xbf16>, vector<8x96xf32> -> vector<8x96xf32>
    %c0_5 = arith.constant 0 : index
    %c0_6 = arith.constant 0 : index
    %8 = vector.load %arg14[%c0_5, %c0_6] : memref<8x96xf32, #tpu.memory_space<vmem>>, vector<8x96xf32>
    tpu.vector_store %arg14[%c0_5, %c0_6], %7 {strides = array<i32>} : memref<8x96xf32, #tpu.memory_space<vmem>>, vector<8x96xf32>,
    %c0_7 = arith.constant 0 : index
    %c0_8 = arith.constant 0 : index
    %c0_9 = arith.constant 0 : index
    %9 = vector.load %arg3[%c0_7, %c0_8, %c0_9] : memref<1x1x8xf32, #tpu.memory_space<vmem>>, vector<1x1x8xf32>
    %10 = vector.shape_cast %9 : vector<1x1x8xf32> to vector<1x8xf32>
    %cst_10 = arith.constant -1.000000e+09 : f32
    %11 = vector.broadcast %cst_10 : f32 to vector<1x8xf32>
    %12 = arith.mulf %10, %11 : vector<1x8xf32>
    %c0_11 = arith.constant 0 : index
    %c0_12 = arith.constant 0 : index
    %13 = vector.load %arg14[%c0_11, %c0_12] : memref<8x96xf32, #tpu.memory_space<vmem>>, vector<8x8xf32>
    %c0_13 = arith.constant 0 : index
    %c32 = arith.constant 32 : index
    %14 = vector.load %arg14[%c0_13, %c32] : memref<8x96xf32, #tpu.memory_space<vmem>>, vector<8x8xf32>
    %c0_14 = arith.constant 0 : index
    %c64 = arith.constant 64 : index
    %15 = vector.load %arg14[%c0_14, %c64] : memref<8x96xf32, #tpu.memory_space<vmem>>, vector<8x8xf32>
    %16 = arith.truncf %13 : vector<8x8xf32> to vector<8x8xbf16>
    %17 = arith.truncf %14 : vector<8x8xf32> to vector<8x8xbf16>
    %cst_15 = arith.constant dense<0.000000e+00> : vector<8x8xf32>
    %18 = tpu.matmul %16, %17, %cst_15 {dimension_numbers = #tpu.dot_dimension_numbers<[1], [1], [0], [0], [0, 0, 1, 0], [], []>} : vector<8x8xbf16>, vector<8x8xbf16>, vector<8x8xf32> -> vector<8x8xf32>
    %19 = vector.broadcast %12 : vector<1x8xf32> to vector<8x8xf32>
    %20 = arith.addf %18, %19 : vector<8x8xf32>
    %cst_16 = arith.constant dense<0xFF800000> : vector<8xf32>
    %21 = vector.multi_reduction <maximumf>, %20, %cst_16 [1] : vector<8x8xf32> to vector<8xf32>
    %22 = vector.shape_cast %21 : vector<8xf32> to vector<8x1xf32>
    %23 = vector.broadcast %22 : vector<8x1xf32> to vector<8x8xf32>
    %24 = arith.subf %20, %23 : vector<8x8xf32>
    %25 = math.exp %24 : vector<8x8xf32>
    %cst_17 = arith.constant dense<0.000000e+00> : vector<8xf32>
    %26 = vector.multi_reduction <add>, %25, %cst_17 [1] : vector<8x8xf32> to vector<8xf32>
    %27 = vector.shape_cast %26 : vector<8xf32> to vector<8x1xf32>
    %28 = tpu.reciprocal %27 {approx = true} : vector<8x1xf32> -> vector<8x1xf32>
    %29 = vector.broadcast %28 : vector<8x1xf32> to vector<8x8xf32>
    %30 = arith.mulf %25, %29 : vector<8x8xf32>
    %31 = arith.truncf %30 : vector<8x8xf32> to vector<8x8xbf16>
    %c0_18 = arith.constant 0 : index
    %c0_19 = arith.constant 0 : index
    %c0_20 = arith.constant 0 : index
    %c0_21 = arith.constant 0 : index
    %c0_22 = arith.constant 0 : index
    %32 = vector.load %arg13[%c0_18, %c0_19, %c0_20, %c0_21, %c0_22] : memref<1x1x4x8x8xbf16, #tpu.memory_space<vmem>>, vector<1x1x1x8x8xbf16>
    %33 = vector.shape_cast %32 : vector<1x1x1x8x8xbf16> to vector<8x8xbf16>
    %34 = vector.shape_cast %31 : vector<8x8xbf16> to vector<1x1x1x8x8xbf16>
    tpu.vector_store %arg13[%c0_18, %c0_19, %c0_20, %c0_21, %c0_22], %34 {strides = array<i32>} : memref<1x1x4x8x8xbf16, #tpu.memory_space<vmem>>, vector<1x1x1x8x8xbf16>,
    %35 = arith.truncf %30 : vector<8x8xf32> to vector<8x8xbf16>
    %36 = arith.truncf %15 : vector<8x8xf32> to vector<8x8xbf16>
    %cst_23 = arith.constant dense<0.000000e+00> : vector<8x8xf32>
    %37 = tpu.matmul %35, %36, %cst_23 {dimension_numbers = #tpu.dot_dimension_numbers<[1], [0], [0], [1], [0, 0, 1, 1], [], []>} : vector<8x8xbf16>, vector<8x8xbf16>, vector<8x8xf32> -> vector<8x8xf32>
    %c0_24 = arith.constant 0 : index
    %c0_25 = arith.constant 0 : index
    %38 = vector.load %arg15[%c0_24, %c0_25] : memref<8x32xf32, #tpu.memory_space<vmem>>, vector<8x8xf32>
    tpu.vector_store %arg15[%c0_24, %c0_25], %37 {strides = array<i32>} : memref<8x32xf32, #tpu.memory_space<vmem>>, vector<8x8xf32>,
    %c0_26 = arith.constant 0 : index
    %c8 = arith.constant 8 : index
    %39 = vector.load %arg14[%c0_26, %c8] : memref<8x96xf32, #tpu.memory_space<vmem>>, vector<8x8xf32>
    %c0_27 = arith.constant 0 : index
    %c40 = arith.constant 40 : index
    %40 = vector.load %arg14[%c0_27, %c40] : memref<8x96xf32, #tpu.memory_space<vmem>>, vector<8x8xf32>
    %c0_28 = arith.constant 0 : index
    %c72 = arith.constant 72 : index
    %41 = vector.load %arg14[%c0_28, %c72] : memref<8x96xf32, #tpu.memory_space<vmem>>, vector<8x8xf32>
    %42 = arith.truncf %39 : vector<8x8xf32> to vector<8x8xbf16>
    %43 = arith.truncf %40 : vector<8x8xf32> to vector<8x8xbf16>
    %cst_29 = arith.constant dense<0.000000e+00> : vector<8x8xf32>
    %44 = tpu.matmul %42, %43, %cst_29 {dimension_numbers = #tpu.dot_dimension_numbers<[1], [1], [0], [0], [0, 0, 1, 0], [], []>} : vector<8x8xbf16>, vector<8x8xbf16>, vector<8x8xf32> -> vector<8x8xf32>
    %45 = vector.broadcast %12 : vector<1x8xf32> to vector<8x8xf32>
    %46 = arith.addf %44, %45 : vector<8x8xf32>
    %cst_30 = arith.constant dense<0xFF800000> : vector<8xf32>
    %47 = vector.multi_reduction <maximumf>, %46, %cst_30 [1] : vector<8x8xf32> to vector<8xf32>
    %48 = vector.shape_cast %47 : vector<8xf32> to vector<8x1xf32>
    %49 = vector.broadcast %48 : vector<8x1xf32> to vector<8x8xf32>
    %50 = arith.subf %46, %49 : vector<8x8xf32>
    %51 = math.exp %50 : vector<8x8xf32>
    %cst_31 = arith.constant dense<0.000000e+00> : vector<8xf32>
    %52 = vector.multi_reduction <add>, %51, %cst_31 [1] : vector<8x8xf32> to vector<8xf32>
    %53 = vector.shape_cast %52 : vector<8xf32> to vector<8x1xf32>
    %54 = tpu.reciprocal %53 {approx = true} : vector<8x1xf32> -> vector<8x1xf32>
    %55 = vector.broadcast %54 : vector<8x1xf32> to vector<8x8xf32>
    %56 = arith.mulf %51, %55 : vector<8x8xf32>
    %57 = arith.truncf %56 : vector<8x8xf32> to vector<8x8xbf16>
    %c0_32 = arith.constant 0 : index
    %c0_33 = arith.constant 0 : index
    %c1 = arith.constant 1 : index
    %c0_34 = arith.constant 0 : index
    %c0_35 = arith.constant 0 : index
    %58 = vector.load %arg13[%c0_32, %c0_33, %c1, %c0_34, %c0_35] : memref<1x1x4x8x8xbf16, #tpu.memory_space<vmem>>, vector<1x1x1x8x8xbf16>
    %59 = vector.shape_cast %58 : vector<1x1x1x8x8xbf16> to vector<8x8xbf16>
    %60 = vector.shape_cast %57 : vector<8x8xbf16> to vector<1x1x1x8x8xbf16>
    tpu.vector_store %arg13[%c0_32, %c0_33, %c1, %c0_34, %c0_35], %60 {strides = array<i32>} : memref<1x1x4x8x8xbf16, #tpu.memory_space<vmem>>, vector<1x1x1x8x8xbf16>,
    %61 = arith.truncf %56 : vector<8x8xf32> to vector<8x8xbf16>
    %62 = arith.truncf %41 : vector<8x8xf32> to vector<8x8xbf16>
    %cst_36 = arith.constant dense<0.000000e+00> : vector<8x8xf32>
    %63 = tpu.matmul %61, %62, %cst_36 {dimension_numbers = #tpu.dot_dimension_numbers<[1], [0], [0], [1], [0, 0, 1, 1], [], []>} : vector<8x8xbf16>, vector<8x8xbf16>, vector<8x8xf32> -> vector<8x8xf32>
    %c0_37 = arith.constant 0 : index
    %c8_38 = arith.constant 8 : index
    %64 = vector.load %arg15[%c0_37, %c8_38] : memref<8x32xf32, #tpu.memory_space<vmem>>, vector<8x8xf32>
    tpu.vector_store %arg15[%c0_37, %c8_38], %63 {strides = array<i32>} : memref<8x32xf32, #tpu.memory_space<vmem>>, vector<8x8xf32>,
    %c0_39 = arith.constant 0 : index
    %c16 = arith.constant 16 : index
    %65 = vector.load %arg14[%c0_39, %c16] : memref<8x96xf32, #tpu.memory_space<vmem>>, vector<8x8xf32>
    %c0_40 = arith.constant 0 : index
    %c48 = arith.constant 48 : index
    %66 = vector.load %arg14[%c0_40, %c48] : memref<8x96xf32, #tpu.memory_space<vmem>>, vector<8x8xf32>
    %c0_41 = arith.constant 0 : index
    %c80 = arith.constant 80 : index
    %67 = vector.load %arg14[%c0_41, %c80] : memref<8x96xf32, #tpu.memory_space<vmem>>, vector<8x8xf32>
    %68 = arith.truncf %65 : vector<8x8xf32> to vector<8x8xbf16>
    %69 = arith.truncf %66 : vector<8x8xf32> to vector<8x8xbf16>
    %cst_42 = arith.constant dense<0.000000e+00> : vector<8x8xf32>
    %70 = tpu.matmul %68, %69, %cst_42 {dimension_numbers = #tpu.dot_dimension_numbers<[1], [1], [0], [0], [0, 0, 1, 0], [], []>} : vector<8x8xbf16>, vector<8x8xbf16>, vector<8x8xf32> -> vector<8x8xf32>
    %71 = vector.broadcast %12 : vector<1x8xf32> to vector<8x8xf32>
    %72 = arith.addf %70, %71 : vector<8x8xf32>
    %cst_43 = arith.constant dense<0xFF800000> : vector<8xf32>
    %73 = vector.multi_reduction <maximumf>, %72, %cst_43 [1] : vector<8x8xf32> to vector<8xf32>
    %74 = vector.shape_cast %73 : vector<8xf32> to vector<8x1xf32>
    %75 = vector.broadcast %74 : vector<8x1xf32> to vector<8x8xf32>
    %76 = arith.subf %72, %75 : vector<8x8xf32>
    %77 = math.exp %76 : vector<8x8xf32>
    %cst_44 = arith.constant dense<0.000000e+00> : vector<8xf32>
    %78 = vector.multi_reduction <add>, %77, %cst_44 [1] : vector<8x8xf32> to vector<8xf32>
    %79 = vector.shape_cast %78 : vector<8xf32> to vector<8x1xf32>
    %80 = tpu.reciprocal %79 {approx = true} : vector<8x1xf32> -> vector<8x1xf32>
    %81 = vector.broadcast %80 : vector<8x1xf32> to vector<8x8xf32>
    %82 = arith.mulf %77, %81 : vector<8x8xf32>
    %83 = arith.truncf %82 : vector<8x8xf32> to vector<8x8xbf16>
    %c0_45 = arith.constant 0 : index
    %c0_46 = arith.constant 0 : index
    %c2 = arith.constant 2 : index
    %c0_47 = arith.constant 0 : index
    %c0_48 = arith.constant 0 : index
    %84 = vector.load %arg13[%c0_45, %c0_46, %c2, %c0_47, %c0_48] : memref<1x1x4x8x8xbf16, #tpu.memory_space<vmem>>, vector<1x1x1x8x8xbf16>
    %85 = vector.shape_cast %84 : vector<1x1x1x8x8xbf16> to vector<8x8xbf16>
    %86 = vector.shape_cast %83 : vector<8x8xbf16> to vector<1x1x1x8x8xbf16>
    tpu.vector_store %arg13[%c0_45, %c0_46, %c2, %c0_47, %c0_48], %86 {strides = array<i32>} : memref<1x1x4x8x8xbf16, #tpu.memory_space<vmem>>, vector<1x1x1x8x8xbf16>,
    %87 = arith.truncf %82 : vector<8x8xf32> to vector<8x8xbf16>
    %88 = arith.truncf %67 : vector<8x8xf32> to vector<8x8xbf16>
    %cst_49 = arith.constant dense<0.000000e+00> : vector<8x8xf32>
    %89 = tpu.matmul %87, %88, %cst_49 {dimension_numbers = #tpu.dot_dimension_numbers<[1], [0], [0], [1], [0, 0, 1, 1], [], []>} : vector<8x8xbf16>, vector<8x8xbf16>, vector<8x8xf32> -> vector<8x8xf32>
    %c0_50 = arith.constant 0 : index
    %c16_51 = arith.constant 16 : index
    %90 = vector.load %arg15[%c0_50, %c16_51] : memref<8x32xf32, #tpu.memory_space<vmem>>, vector<8x8xf32>
    tpu.vector_store %arg15[%c0_50, %c16_51], %89 {strides = array<i32>} : memref<8x32xf32, #tpu.memory_space<vmem>>, vector<8x8xf32>,
    %c0_52 = arith.constant 0 : index
    %c24 = arith.constant 24 : index
    %91 = vector.load %arg14[%c0_52, %c24] : memref<8x96xf32, #tpu.memory_space<vmem>>, vector<8x8xf32>
    %c0_53 = arith.constant 0 : index
    %c56 = arith.constant 56 : index
    %92 = vector.load %arg14[%c0_53, %c56] : memref<8x96xf32, #tpu.memory_space<vmem>>, vector<8x8xf32>
    %c0_54 = arith.constant 0 : index
    %c88 = arith.constant 88 : index
    %93 = vector.load %arg14[%c0_54, %c88] : memref<8x96xf32, #tpu.memory_space<vmem>>, vector<8x8xf32>
    %94 = arith.truncf %91 : vector<8x8xf32> to vector<8x8xbf16>
    %95 = arith.truncf %92 : vector<8x8xf32> to vector<8x8xbf16>
    %cst_55 = arith.constant dense<0.000000e+00> : vector<8x8xf32>
    %96 = tpu.matmul %94, %95, %cst_55 {dimension_numbers = #tpu.dot_dimension_numbers<[1], [1], [0], [0], [0, 0, 1, 0], [], []>} : vector<8x8xbf16>, vector<8x8xbf16>, vector<8x8xf32> -> vector<8x8xf32>
    %97 = vector.broadcast %12 : vector<1x8xf32> to vector<8x8xf32>
    %98 = arith.addf %96, %97 : vector<8x8xf32>
    %cst_56 = arith.constant dense<0xFF800000> : vector<8xf32>
    %99 = vector.multi_reduction <maximumf>, %98, %cst_56 [1] : vector<8x8xf32> to vector<8xf32>
    %100 = vector.shape_cast %99 : vector<8xf32> to vector<8x1xf32>
    %101 = vector.broadcast %100 : vector<8x1xf32> to vector<8x8xf32>
    %102 = arith.subf %98, %101 : vector<8x8xf32>
    %103 = math.exp %102 : vector<8x8xf32>
    %cst_57 = arith.constant dense<0.000000e+00> : vector<8xf32>
    %104 = vector.multi_reduction <add>, %103, %cst_57 [1] : vector<8x8xf32> to vector<8xf32>
    %105 = vector.shape_cast %104 : vector<8xf32> to vector<8x1xf32>
    %106 = tpu.reciprocal %105 {approx = true} : vector<8x1xf32> -> vector<8x1xf32>
    %107 = vector.broadcast %106 : vector<8x1xf32> to vector<8x8xf32>
    %108 = arith.mulf %103, %107 : vector<8x8xf32>
    %109 = arith.truncf %108 : vector<8x8xf32> to vector<8x8xbf16>
    %c0_58 = arith.constant 0 : index
    %c0_59 = arith.constant 0 : index
    %c3 = arith.constant 3 : index
    %c0_60 = arith.constant 0 : index
    %c0_61 = arith.constant 0 : index
    %110 = vector.load %arg13[%c0_58, %c0_59, %c3, %c0_60, %c0_61] : memref<1x1x4x8x8xbf16, #tpu.memory_space<vmem>>, vector<1x1x1x8x8xbf16>
    %111 = vector.shape_cast %110 : vector<1x1x1x8x8xbf16> to vector<8x8xbf16>
    %112 = vector.shape_cast %109 : vector<8x8xbf16> to vector<1x1x1x8x8xbf16>
    tpu.vector_store %arg13[%c0_58, %c0_59, %c3, %c0_60, %c0_61], %112 {strides = array<i32>} : memref<1x1x4x8x8xbf16, #tpu.memory_space<vmem>>, vector<1x1x1x8x8xbf16>,
    %113 = arith.truncf %108 : vector<8x8xf32> to vector<8x8xbf16>
    %114 = arith.truncf %93 : vector<8x8xf32> to vector<8x8xbf16>
    %cst_62 = arith.constant dense<0.000000e+00> : vector<8x8xf32>
    %115 = tpu.matmul %113, %114, %cst_62 {dimension_numbers = #tpu.dot_dimension_numbers<[1], [0], [0], [1], [0, 0, 1, 1], [], []>} : vector<8x8xbf16>, vector<8x8xbf16>, vector<8x8xf32> -> vector<8x8xf32>
    %c0_63 = arith.constant 0 : index
    %c24_64 = arith.constant 24 : index
    %116 = vector.load %arg15[%c0_63, %c24_64] : memref<8x32xf32, #tpu.memory_space<vmem>>, vector<8x8xf32>
    tpu.vector_store %arg15[%c0_63, %c24_64], %115 {strides = array<i32>} : memref<8x32xf32, #tpu.memory_space<vmem>>, vector<8x8xf32>,
    %c0_65 = arith.constant 0 : index
    %c0_66 = arith.constant 0 : index
    %117 = vector.load %arg15[%c0_65, %c0_66] : memref<8x32xf32, #tpu.memory_space<vmem>>, vector<8x32xf32>
    %c0_67 = arith.constant 0 : index
    %c0_68 = arith.constant 0 : index
    %c0_69 = arith.constant 0 : index
    %118 = vector.load %arg5[%c0_67, %c0_68, %c0_69] : memref<1x32x32xbf16, #tpu.memory_space<vmem>>, vector<1x32x32xbf16>
    %119 = vector.shape_cast %118 : vector<1x32x32xbf16> to vector<32x32xbf16>
    %120 = arith.truncf %117 : vector<8x32xf32> to vector<8x32xbf16>
    %cst_70 = arith.constant dense<0.000000e+00> : vector<8x32xf32>
    %121 = tpu.matmul %120, %119, %cst_70 {dimension_numbers = #tpu.dot_dimension_numbers<[1], [0], [0], [1], [0, 0, 1, 1], [], []>} : vector<8x32xbf16>, vector<32x32xbf16>, vector<8x32xf32> -> vector<8x32xf32>
    %122 = arith.addf %121, %3 : vector<8x32xf32>
    %c0_71 = arith.constant 0 : index
    %c0_72 = arith.constant 0 : index
    %c0_73 = arith.constant 0 : index
    %123 = vector.load %arg6[%c0_71, %c0_72, %c0_73] : memref<1x1x32xf32, #tpu.memory_space<vmem>>, vector<1x1x32xf32>
    %124 = vector.shape_cast %123 : vector<1x1x32xf32> to vector<1x32xf32>
    %c0_74 = arith.constant 0 : index
    %c0_75 = arith.constant 0 : index
    %c0_76 = arith.constant 0 : index
    %125 = vector.load %arg7[%c0_74, %c0_75, %c0_76] : memref<1x1x32xf32, #tpu.memory_space<vmem>>, vector<1x1x32xf32>
    %126 = vector.shape_cast %125 : vector<1x1x32xf32> to vector<1x32xf32>
    %cst_77 = arith.constant dense<0.000000e+00> : vector<8xf32>
    %127 = vector.multi_reduction <add>, %122, %cst_77 [1] : vector<8x32xf32> to vector<8xf32>
    %128 = vector.shape_cast %127 : vector<8xf32> to vector<8x1xf32>
    %cst_78 = arith.constant 3.200000e+01 : f32
    %129 = vector.broadcast %cst_78 : f32 to vector<8x1xf32>
    %130 = arith.divf %128, %129 : vector<8x1xf32>
    %131 = arith.mulf %122, %122 : vector<8x32xf32>
    %cst_79 = arith.constant dense<0.000000e+00> : vector<8xf32>
    %132 = vector.multi_reduction <add>, %131, %cst_79 [1] : vector<8x32xf32> to vector<8xf32>
    %133 = vector.shape_cast %132 : vector<8xf32> to vector<8x1xf32>
    %cst_80 = arith.constant 3.200000e+01 : f32
    %134 = vector.broadcast %cst_80 : f32 to vector<8x1xf32>
    %135 = arith.divf %133, %134 : vector<8x1xf32>
    %136 = arith.mulf %130, %130 : vector<8x1xf32>
    %137 = arith.subf %135, %136 : vector<8x1xf32>
    %138 = vector.broadcast %130 : vector<8x1xf32> to vector<8x32xf32>
    %139 = arith.subf %122, %138 : vector<8x32xf32>
    %cst_81 = arith.constant 9.99999974E-6 : f32
    %140 = vector.broadcast %cst_81 : f32 to vector<8x1xf32>
    %141 = arith.addf %137, %140 : vector<8x1xf32>
    %142 = math.rsqrt %141 : vector<8x1xf32>
    %143 = vector.broadcast %142 : vector<8x1xf32> to vector<8x32xf32>
    %144 = arith.mulf %139, %143 : vector<8x32xf32>
    %145 = vector.broadcast %124 : vector<1x32xf32> to vector<8x32xf32>
    %146 = arith.mulf %144, %145 : vector<8x32xf32>
    %147 = vector.broadcast %126 : vector<1x32xf32> to vector<8x32xf32>
    %148 = arith.addf %146, %147 : vector<8x32xf32>
    %149 = arith.truncf %148 : vector<8x32xf32> to vector<8x32xbf16>
    %cst_82 = arith.constant 0.000000e+00 : f32
    %150 = vector.broadcast %cst_82 : f32 to vector<8x32xf32>
    %c0_83 = arith.constant 0 : index
    %c0_84 = arith.constant 0 : index
    %151 = vector.load %arg16[%c0_83, %c0_84] : memref<8x32xf32, #tpu.memory_space<vmem>>, vector<8x32xf32>
    tpu.vector_store %arg16[%c0_83, %c0_84], %150 {strides = array<i32>} : memref<8x32xf32, #tpu.memory_space<vmem>>, vector<8x32xf32>,
    %c0_85 = arith.constant 0 : index
    %c0_86 = arith.constant 0 : index
    %c0_87 = arith.constant 0 : index
    %152 = vector.load %arg8[%c0_85, %c0_86, %c0_87] : memref<1x32x64xbf16, #tpu.memory_space<vmem>>, vector<1x32x64xbf16>
    %153 = vector.shape_cast %152 : vector<1x32x64xbf16> to vector<32x64xbf16>
    %cst_88 = arith.constant dense<0.000000e+00> : vector<8x64xf32>
    %154 = tpu.matmul %149, %153, %cst_88 {dimension_numbers = #tpu.dot_dimension_numbers<[1], [0], [0], [1], [0, 0, 1, 1], [], []>} : vector<8x32xbf16>, vector<32x64xbf16>, vector<8x64xf32> -> vector<8x64xf32>
    %cst_89 = arith.constant 0.000000e+00 : f32
    %155 = vector.broadcast %cst_89 : f32 to vector<8x64xf32>
    %156 = arith.maximumf %154, %155 : vector<8x64xf32>
    %c0_90 = arith.constant 0 : index
    %c0_91 = arith.constant 0 : index
    %157 = vector.load %arg16[%c0_90, %c0_91] : memref<8x32xf32, #tpu.memory_space<vmem>>, vector<8x32xf32>
    %158 = arith.truncf %156 : vector<8x64xf32> to vector<8x64xbf16>
    %c0_92 = arith.constant 0 : index
    %c0_93 = arith.constant 0 : index
    %c0_94 = arith.constant 0 : index
    %159 = vector.load %arg9[%c0_92, %c0_93, %c0_94] : memref<1x64x32xbf16, #tpu.memory_space<vmem>>, vector<1x64x32xbf16>
    %160 = vector.shape_cast %159 : vector<1x64x32xbf16> to vector<64x32xbf16>
    %cst_95 = arith.constant dense<0.000000e+00> : vector<8x32xf32>
    %161 = tpu.matmul %158, %160, %cst_95 {dimension_numbers = #tpu.dot_dimension_numbers<[1], [0], [0], [1], [0, 0, 1, 1], [], []>} : vector<8x64xbf16>, vector<64x32xbf16>, vector<8x32xf32> -> vector<8x32xf32>
    %162 = arith.addf %157, %161 : vector<8x32xf32>
    %c0_96 = arith.constant 0 : index
    %c0_97 = arith.constant 0 : index
    %163 = vector.load %arg16[%c0_96, %c0_97] : memref<8x32xf32, #tpu.memory_space<vmem>>, vector<8x32xf32>
    tpu.vector_store %arg16[%c0_96, %c0_97], %162 {strides = array<i32>} : memref<8x32xf32, #tpu.memory_space<vmem>>, vector<8x32xf32>,
    %c0_98 = arith.constant 0 : index
    %c0_99 = arith.constant 0 : index
    %164 = vector.load %arg16[%c0_98, %c0_99] : memref<8x32xf32, #tpu.memory_space<vmem>>, vector<8x32xf32>
    %165 = arith.addf %164, %148 : vector<8x32xf32>
    %c0_100 = arith.constant 0 : index
    %c0_101 = arith.constant 0 : index
    %c0_102 = arith.constant 0 : index
    %166 = vector.load %arg10[%c0_100, %c0_101, %c0_102] : memref<1x1x32xf32, #tpu.memory_space<vmem>>, vector<1x1x32xf32>
    %167 = vector.shape_cast %166 : vector<1x1x32xf32> to vector<1x32xf32>
    %c0_103 = arith.constant 0 : index
    %c0_104 = arith.constant 0 : index
    %c0_105 = arith.constant 0 : index
    %168 = vector.load %arg11[%c0_103, %c0_104, %c0_105] : memref<1x1x32xf32, #tpu.memory_space<vmem>>, vector<1x1x32xf32>
    %169 = vector.shape_cast %168 : vector<1x1x32xf32> to vector<1x32xf32>
    %cst_106 = arith.constant dense<0.000000e+00> : vector<8xf32>
    %170 = vector.multi_reduction <add>, %165, %cst_106 [1] : vector<8x32xf32> to vector<8xf32>
    %171 = vector.shape_cast %170 : vector<8xf32> to vector<8x1xf32>
    %cst_107 = arith.constant 3.200000e+01 : f32
    %172 = vector.broadcast %cst_107 : f32 to vector<8x1xf32>
    %173 = arith.divf %171, %172 : vector<8x1xf32>
    %174 = arith.mulf %165, %165 : vector<8x32xf32>
    %cst_108 = arith.constant dense<0.000000e+00> : vector<8xf32>
    %175 = vector.multi_reduction <add>, %174, %cst_108 [1] : vector<8x32xf32> to vector<8xf32>
    %176 = vector.shape_cast %175 : vector<8xf32> to vector<8x1xf32>
    %cst_109 = arith.constant 3.200000e+01 : f32
    %177 = vector.broadcast %cst_109 : f32 to vector<8x1xf32>
    %178 = arith.divf %176, %177 : vector<8x1xf32>
    %179 = arith.mulf %173, %173 : vector<8x1xf32>
    %180 = arith.subf %178, %179 : vector<8x1xf32>
    %181 = vector.broadcast %173 : vector<8x1xf32> to vector<8x32xf32>
    %182 = arith.subf %165, %181 : vector<8x32xf32>
    %cst_110 = arith.constant 9.99999974E-6 : f32
    %183 = vector.broadcast %cst_110 : f32 to vector<8x1xf32>
    %184 = arith.addf %180, %183 : vector<8x1xf32>
    %185 = math.rsqrt %184 : vector<8x1xf32>
    %186 = vector.broadcast %185 : vector<8x1xf32> to vector<8x32xf32>
    %187 = arith.mulf %182, %186 : vector<8x32xf32>
    %188 = vector.broadcast %167 : vector<1x32xf32> to vector<8x32xf32>
    %189 = arith.mulf %187, %188 : vector<8x32xf32>
    %190 = vector.broadcast %169 : vector<1x32xf32> to vector<8x32xf32>
    %191 = arith.addf %189, %190 : vector<8x32xf32>
    %c0_111 = arith.constant 0 : index
    %c0_112 = arith.constant 0 : index
    %192 = vector.load %arg12[%c0_111, %c0_112] : memref<8x32xf32, #tpu.memory_space<vmem>>, vector<8x32xf32>
    tpu.vector_store %arg12[%c0_111, %c0_112], %191 {strides = array<i32>} : memref<8x32xf32, #tpu.memory_space<vmem>>, vector<8x32xf32>,
    return
  }
  func.func @transform_0(%arg0: i32, %arg1: i32) -> (i32, i32) {
    %c0_i32 = arith.constant 0 : i32
    %c0_i32_0 = arith.constant 0 : i32
    return %arg0, %c0_i32 : i32, i32
  }
  func.func @transform_1(%arg0: i32, %arg1: i32) -> (i32, i32, i32) {
    %c0_i32 = arith.constant 0 : i32
    %c0_i32_0 = arith.constant 0 : i32
    %c0_i32_1 = arith.constant 0 : i32
    return %arg0, %c0_i32, %c0_i32_0 : i32, i32, i32
  }
  func.func @transform_2(%arg0: i32, %arg1: i32) -> (i32, i32, i32) {
    %c0_i32 = arith.constant 0 : i32
    %c0_i32_0 = arith.constant 0 : i32
    %c0_i32_1 = arith.constant 0 : i32
    return %arg1, %c0_i32, %c0_i32_0 : i32, i32, i32
  }
  func.func @transform_3(%arg0: i32, %arg1: i32) -> (i32, i32, i32) {
    %c0_i32 = arith.constant 0 : i32
    %c0_i32_0 = arith.constant 0 : i32
    %c0_i32_1 = arith.constant 0 : i32
    return %arg1, %c0_i32, %c0_i32_0 : i32, i32, i32
  }
  func.func @transform_4(%arg0: i32, %arg1: i32) -> (i32, i32, i32) {
    %c0_i32 = arith.constant 0 : i32
    %c0_i32_0 = arith.constant 0 : i32
    %c0_i32_1 = arith.constant 0 : i32
    return %arg1, %c0_i32, %c0_i32_0 : i32, i32, i32
  }
  func.func @transform_5(%arg0: i32, %arg1: i32) -> (i32, i32, i32) {
    %c0_i32 = arith.constant 0 : i32
    %c0_i32_0 = arith.constant 0 : i32
    %c0_i32_1 = arith.constant 0 : i32
    return %arg1, %c0_i32, %c0_i32_0 : i32, i32, i32
  }
  func.func @transform_6(%arg0: i32, %arg1: i32) -> (i32, i32, i32) {
    %c0_i32 = arith.constant 0 : i32
    %c0_i32_0 = arith.constant 0 : i32
    %c0_i32_1 = arith.constant 0 : i32
    return %arg1, %c0_i32, %c0_i32_0 : i32, i32, i32
  }
  func.func @transform_7(%arg0: i32, %arg1: i32) -> (i32, i32, i32) {
    %c0_i32 = arith.constant 0 : i32
    %c0_i32_0 = arith.constant 0 : i32
    %c0_i32_1 = arith.constant 0 : i32
    return %arg1, %c0_i32, %c0_i32_0 : i32, i32, i32
  }
  func.func @transform_8(%arg0: i32, %arg1: i32) -> (i32, i32, i32) {
    %c0_i32 = arith.constant 0 : i32
    %c0_i32_0 = arith.constant 0 : i32
    %c0_i32_1 = arith.constant 0 : i32
    return %arg1, %c0_i32, %c0_i32_0 : i32, i32, i32
  }
  func.func @transform_9(%arg0: i32, %arg1: i32) -> (i32, i32, i32) {
    %c0_i32 = arith.constant 0 : i32
    %c0_i32_0 = arith.constant 0 : i32
    %c0_i32_1 = arith.constant 0 : i32
    return %arg1, %c0_i32, %c0_i32_0 : i32, i32, i32
  }
  func.func @transform_10(%arg0: i32, %arg1: i32) -> (i32, i32) {
    %c0_i32 = arith.constant 0 : i32
    %c0_i32_0 = arith.constant 0 : i32
    return %arg0, %c0_i32 : i32, i32
  }
  func.func @transform_11(%arg0: i32, %arg1: i32) -> (i32, i32, i32, i32, i32) {
    %c0_i32 = arith.constant 0 : i32
    %c0_i32_0 = arith.constant 0 : i32
    %c0_i32_1 = arith.constant 0 : i32
    %c0_i32_2 = arith.constant 0 : i32
    return %arg1, %arg0, %c0_i32, %c0_i32_0, %c0_i32_1 : i32, i32, i32, i32, i32
  }
}

</mosaic_0001>

<bundles_post_ra>
// kernel: tpu_custom_call.1
= control target key start
LH: loop header
LB: loop body
LE: loop exit
PB: predicated region body
PF: predicated region fallthrough
CT: control target
= control target key end

     0   :  { %s2733_s0 = inlined_call_operand.hbm [shape: f32[16,32], index: 0, kind: input, shape index: {}]   ;;  %s2734_s1 = inlined_call_operand.vmem [shape: f32[2,1,8], index: 1, kind: input, shape index: {}]   ;;  %s2735_s2 = inlined_call_operand.vmem [shape: bf16[2,32,96], index: 2, kind: input, shape index: {}]   ;;  %s2736_s3 = inlined_call_operand.vmem [shape: bf16[2,32,32], index: 3, kind: input, shape index: {}]   ;;  %s2737_s4 = inlined_call_operand.vmem [shape: f32[2,1,32], index: 4, kind: input, shape index: {}]   ;;  %s2738_s5 = inlined_call_operand.vmem [shape: f32[2,1,32], index: 5, kind: input, shape index: {}]   ;;  %s2739_s6 = inlined_call_operand.vmem [shape: bf16[2,32,64], index: 6, kind: input, shape index: {}]   ;;  %s2740_s7 = inlined_call_operand.vmem [shape: bf16[2,64,32], index: 7, kind: input, shape index: {}]   ;;  %s2741_s8 = inlined_call_operand.vmem [shape: f32[2,1,32], index: 8, kind: input, shape index: {}]   ;;  %s2742_s9 = inlined_call_operand.vmem [shape: f32[2,1,32], index: 9, kind: input, shape index: {}]   ;;  %s2743_s10 = inlined_call_operand.hbm [shape: f32[16,32], index: 10, kind: output, shape index: {0}]   ;;  %s2744_s11 = inlined_call_operand.hbm [shape: bf16[2,2,4,8,8], index: 11, kind: output, shape index: {1}]  }
   0x1   :  { %2771 = sst [smem:[#allocation33_spill]] %s2733_s0 }
   0x2   :  { %2772 = sst [smem:[#allocation34_spill]] %s2735_s2 }
   0x3   :  { %2773 = sst [smem:[#allocation35_spill]] %s2736_s3 }
   0x4   :  { %2774 = sst [smem:[#allocation36_spill]] %s2740_s7 }
   0x5   :  { %2775 = sst [smem:[#allocation37_spill]] %s2741_s8 }
   0x6   :  { %2776 = sst [smem:[#allocation38_spill]] %s2742_s9 }
   0x7   :  { %2777 = sst [smem:[#allocation39_spill]] %s2743_s10 }
   0x8   :  { %2778 = sst [smem:[#allocation40_spill]] %s2744_s11 }
   0x9   :  { %17 = vsyncpa [#allocation6], 0 }
   0xa   :  { %19 = vsyncpa [#allocation6 + $0x1], 0 }
   0xb   :  { %20 = vsyncpa [#allocation7], 0 }
   0xc   :  { %22 = vsyncpa [#allocation7 + $0x1], 0 }
   0xd   :  { %23 = vsyncpa [#allocation10], 0 }
   0xe   :  { %25 = vsyncpa [#allocation10 + $0x1], 0  ;;  %s2245_s17 = smov 0   ;;  %s2247_s18 = smov 0  }
   0xf   :  { %s2249_s19 = smov 0   ;;  %s2251_s20 = smov 0  }
  0x10   :  { %s2253_s21 = smov 0   ;;  %s2255_s22 = smov 0  }
  0x11   :  { %s2257_s23 = smov 0   ;;  %s2259_s24 = smov 0  }
  0x12   :  { %s2261_s25 = smov 0   ;;  %s2263_s26 = smov 0  }
  0x13   :  { %s2265_s27 = smov 0  }
  0x14 LB: > { %2779 = sst [smem:[#allocation14_spill]] %s2123_s17  ;;  %s1651_s28 = sadd.s32 4294967295, %s2163_s27   ;;  %s2163_s27 = sphi %s2265_s27, %s31_s27   ;;  %s2159_s26 = sphi %s2263_s26, %s2847_s26   ;;  %s2155_s25 = sphi %s2261_s25, %s2846_s25   ;;  %s2151_s24 = sphi %s2259_s24, %s2845_s24   ;;  %s2147_s23 = sphi %s2257_s23, %s2844_s23   ;;  %s2143_s22 = sphi %s2255_s22, %s2843_s22   ;;  %s2139_s21 = sphi %s2253_s21, %s2842_s21   ;;  %s2135_s20 = sphi %s2251_s20, %s2841_s20   ;;  %s2131_s19 = sphi %s2249_s19, %s2840_s19   ;;  %s2127_s18 = sphi %s2247_s18, %s2839_s18   ;;  %s2123_s17 = sphi %s2245_s17, %s2838_s17  }
  0x15   : > { %2780 = sst [smem:[#allocation15_spill]] %s2127_s18  ;;  %s1652_s29 = sadd.s32 4294967294, %s2163_s27  }
  0x16   : > { %2781 = sst [smem:[#allocation16_spill]] %s2131_s19  ;;  %s40_s30 = sadd.s32 1, %s2155_s25 }
  0x17   : > { %2782 = sst [smem:[#allocation17_spill]] %s2135_s20  ;;  %s43_s12 = sadd.s32 1, %s2159_s26 }
  0x18   : > { %2783 = sst [smem:[#allocation18_spill]] %s2139_s21  ;;  %p41_p0 = scmp.ge.s32.totalorder %s40_s30, 2 }
  0x19   : > { %2784 = sst [smem:[#allocation19_spill]] %s2143_s22  ;;  %s50_s13 = sadd.s32 1, %s2143_s22 }
  0x1a   : > { %2785 = sst [smem:[#allocation20_spill]] %s2151_s24  ;;  %p57_p1 = scmp.ne.s32.totalorder %s2143_s22, %s2139_s21 }
  0x1b   : > { %2786 = sst [smem:[#allocation21_spill]] %s2155_s25  ;;  %p58_p2 = scmp.eq.s32.totalorder %s2163_s27, 0 }
  0x1c   : > { %2787 = sst [smem:[#allocation22_spill]] %s2159_s26  ;;  %s2849_s30 = smov (%p41_p0, %s40_s30), 0 }
  0x1d   : > { %2788 = sst [smem:[#allocation23_spill]] %s2163_s27  ;;  %s2851_s12 = smov (!%p41_p0, %s43_s12), %s2159_s26 }
  0x1e   : > { %2789 = sst [smem:[#allocation24_spill]] %s2849_s30  ;;  %p2311_p3 = por %p58_p2, %p57_p1 }
  0x1f   : > { %p63_p4 = scmp.ne.s32.totalorder %s2139_s21, %s2135_s20  ;;  %p45_p5 = scmp.ge.s32.totalorder %s2851_s12, 2 }
  0x20   : > { %p64_p6 = scmp.eq.s32.totalorder %s1651_s28, 0  ;;  %p2317_p7 = scmp.eq.s32.totalorder %s1651_s28, 3 }
  0x21   : > { %p2321_p8 = scmp.eq.s32.totalorder %s1652_s29, 3  ;;  %s2853_s12 = smov (%p45_p5, %s2851_s12), 0 }
  0x22   : > { %2793 = sst [smem:[#allocation25_spill]] %s2853_s12  ;;  %p2327_p9 = por %p64_p6, %p63_p4 }
  0x23   : > { %p2333_p10 = por %p2317_p7, %p57_p1  ;;  %s47_s29 = ssub.s32 %s2159_s26, %s2853_s12 }
  0x24   : > { %p2341_p11 = por %p2321_p8, %p63_p4  ;;  %p48_p12 = scmp.eq.s32.totalorder %s47_s29, 0 }
  0x25   : > { %s2795_s28 = scalar_select %p2333_p10, 1, 0 }
  0x26   : > { %s2797_s10 = scalar_select %p2341_p11, 1, 0 }
  0x27   : > { %2796 = sst [smem:[#allocation26_spill]] %s2795_s28  ;;  %s333_s11 = ssub.s32 %s2155_s25, %s2849_s30 }
  0x28   : > { %2798 = sst [smem:[#allocation27_spill]] %s2797_s10  ;;  %s335_s9 = sor.u32 %s333_s11, %s47_s29 }
  0x29   : > { %s338_s7 = sadd.s32 1, %s2131_s19  ;;  %p336_p13 = scmp.eq.s32.totalorder %s335_s9, 0 }
  0x2a   : > { %s2349_s8 = scalar_select %p48_p12, %s2143_s22, %s50_s13  }
  0x2b   : > { %p348_p0 = scmp.ne.s32.totalorder %s2131_s19, %s2127_s18  ;;  %p354_p1 = scmp.ne.s32.totalorder %s2127_s18, %s2123_s17 }
  0x2c   : > { %2799 = sst [smem:[#allocation28_spill]] %s2349_s8  ;;  %p1842_p5 = scmp.lt.s32.totalorder %s2163_s27, 4 }
  0x2d   : > { %s2356_s28 = scalar_select %p336_p13, %s2131_s19, %s338_s7  }
  0x2e   : > { %p2360_p2 = por %p348_p0, %p2317_p7  ;;  %p2366_p4 = por %p354_p1, %p2321_p8 }
  0x2f   : > { %2800 = sst [smem:[#allocation29_spill]] %s2356_s28  ;;  %s375_s11 = sand.u32 1, %s2143_s22  }
  0x30   : > { %s2801_s12 = scalar_select %p2360_p2, 1, 0 }
  0x31   : > { %s2803_s30 = scalar_select %p2366_p4, 1, 0 }
  0x32   : > { %2802 = sst [smem:[#allocation30_spill]] %s2801_s12  ;;  %s1655_s13 = sshll.u32 %s375_s11, 3 }
  0x33   : > { %2804 = sst [smem:[#allocation31_spill]] %s2803_s30  ;;  %s1656_s29 = sshll.u32 %s2159_s26, 7 }
  0x34   : > { %s2805_s0 = sld [smem:[#allocation33_spill]]  ;;  %s379_s7 = scalar_lea.vmem [#allocation5], %s1655_s13 }
  0x35   : > { %s386_s15 = sshll.u32 %s379_s7, 4  ;;  %p2382_p6 = pnand %p1842_p5, %p2311_p3  ;;  %s2378_s15 = int_to_ptr.vmem [resolvable:$true] %s386_s15 }
  0x36   : > { %s376_s25 = scalar_lea.sflag [#allocation6], %s375_s11 }
  0x37   : > { %p1981_p13 = pneg %p2382_p6 }
  0x3a   : > { %s2376_s8 = scalar_lea.hbm %s2805_s0, %s1656_s29  ;;  %s1984_s14 = scalar_lea.hbm %s2805_s0, 256 }
  0x3b   : > { %s1979_s29 = scalar_lea.hbm %s2376_s8, 128  ;;  %p1985_p3 = scmp.lt.u32.totalorder %s2376_s8, %s2805_s0 }
  0x3c   : > { %p1980_p12 = scmp.ne.s32.totalorder %s2376_s8, %s1979_s29  ;;  %p1986_p5 = scmp.lt.u32.totalorder %s1984_s14, %s1979_s29 }
  0x3d   : > { %p1988_p8 = scmp.lt.u32.totalorder %s1979_s29, %s2376_s8 }
  0x3e   : > { %p1982_p0 = pnand %p1981_p13, %p1980_p12  ;;  %p1987_p7 = por %p1986_p5, %p1985_p3 }
  0x40   : > { %p1983_p1 = pneg %p1982_p0  ;;  %p1989_p4 = por %p1988_p8, %p1987_p7 }
  0x42   : > { %p1990_p11 = pnand %p1989_p4, %p1983_p1 }
  0x44   : > { %1993 = shalt.err (!%p1990_p11)
}
  0x45   : > { %s1994_s11 = scalar_lea.vmem %s2378_s15, 128  ;;  %s2165_s13 = smov [#allocation5]  }
  0x46   : > { %p1995_p12 = scmp.ne.s32.totalorder %s2378_s15, %s1994_s11  ;;  %s1999_s9 = sshll.u32 %s2165_s13, 4  ;;  %s2000_s9 = int_to_ptr.vmem [resolvable:$false] %s1999_s9 }
  0x47   : > { %s2001_s26 = scalar_lea.vmem %s2000_s9, 256  ;;  %p2002_p2 = scmp.lt.s32.totalorder %s2378_s15, %s2000_s9 }
  0x48   : > { %p1997_p0 = pnand %p1995_p12, %p1981_p13  ;;  %p2003_p3 = scmp.lt.s32.totalorder %s2001_s26, %s1994_s11 }
  0x4a   : > { %p1998_p10 = pneg %p1997_p0  ;;  %p2004_p5 = por %p2003_p3, %p2002_p2 }
  0x4c   : > { %p2005_p7 = pnand %p2004_p5, %p1998_p10 }
  0x4e   : > { %2008 = shalt.err (!%p2005_p7)
}
  0x4f   : > { %1834 = dma.hbm_to_vmem [thread:$0]  (!%p2382_p6), %s2376_s8, 128, %s2378_s15, %s376_s25  }
  0x50   : > { %p2807_p11 = scmp.lt.s32.totalorder %s2163_s27, 5  ;;  %p2808_p4 = scmp.ge.s32.totalorder %s2163_s27, 1 }
  0x52   : > { %p454_p8 = pnand %p2808_p4, %p2807_p11 }
  0x54   : > { %457 = sbr.rel (%p454_p8) target bundleno = 2404 (0x964), region = 60 }
  0x5b   : > { %s2418_s29 = sand.u32 1, %s2139_s21  }
  0x5c   : > { %2809 = sst [smem:[#allocation32_spill]] %s2418_s29  ;;  %s1658_s14 = sshll.u32 %s2418_s29, 3 }
  0x5d   : > { %s460_s7 = scalar_lea.sflag [#allocation6], %s2418_s29  ;;  %s463_s11 = scalar_lea.vmem [#allocation5], %s1658_s14 }
  0x5e   : > { %2110 = dma.done.wait (%p2327_p9), %s460_s7, 128  }
  0x5f   : > { %2112 = vsyncadd (%p2327_p9), %s460_s7, 4294967168  ;;  %s2756_s8 = sand.u32 1, %s2127_s18   ;;  %p542_p10 = scmp.lt.s32.totalorder %s2151_s24, 1 }
  0x60   : > { %s1660_s15 = sshll.u32 %s2756_s8, 4  ;;  %p545_p2 = scmp.lt.s32.totalorder %s2147_s23, 1 }
  0x61   : > { %s2432_s16 = scalar_select %p542_p10, %s2151_s24, 1 }
  0x62   : > { %s2435_s25 = scalar_select %p545_p2, %s2147_s23, 1 }
  0x63   : > { %s2810_s2 = sld [smem:[#allocation34_spill]]  ;;  %s2811_s3 = sld [smem:[#allocation35_spill]] }
  0x64   : > { %s1707_s26 = sshll.u32 %s2435_s25, 4  ;;  %s1710_s8 = sshll.u32 %s2435_s25, 5 }
  0x65   : > { %s2461_s29 = scalar_lea.vmem %s2739_s6, %s1707_s26  ;;  %s2812_s12 = sld [smem:[#allocation37_spill]] }
  0x66   : > { %s2813_s18 = sld [smem:[#allocation36_spill]]  ;;  %s2814_s24 = sld [smem:[#allocation38_spill]] }
  0x67   : > { %s2477_s9 = scalar_lea.vmem [#allocation8], %s1658_s14  ;;  %s2479_s10 = scalar_lea.vmem [#allocation9], %s1660_s15 }
  0x68   : > { %p1669_p9 = scmp.ne.s32.totalorder %s2147_s23, 0 }
  0x69   : > { %s549_s28 = scalar_lea.vmem %s2810_s2, %s1707_s26  ;;  %s2452_s13 = scalar_lea.vmem %s2811_s3, %s1707_s26  ;;  %v582_v0 = vld [vmem:[%s463_s11] sm:$0xff] (!%p1669_p9)  ;;  %vm583_vm0 = vcmask (!%p1669_p9), 261120  }
  0x6a   : > { %581 = sbr.rel (%p1669_p9) target bundleno = 113 (0x71), region = 68  ;;  %584 = vst.msk [vmem:[%s2477_s9] sm:$0xff] (!%p1669_p9), %vm583_vm0, %v582_v0 }
  0x6b   : > { %s573_s21 = scalar_lea.vmem %s2812_s12, %s2435_s25 }
  0x6c   : > { %s2471_s19 = scalar_lea.vmem %s2813_s18, %s1710_s8  ;;  %s576_s17 = scalar_lea.vmem %s2814_s24, %s2435_s25 }
  0x71 PF: > { %v1949_v1 = vld [vmem:[%s549_s28] sm:$0xff]   ;;  %v2166_v2 = vmov 0.0   ;;  %v1950_v3 = vld [vmem:[%s549_s28 + $0x8] sm:$0xff]   ;;  %vm2167_vm1 = vmmov 0   ;;  %vm603_vm2 = vcmask 261120   ;;  %vm647_vm3 = vcmask 785408   ;;  %s2815_s11 = scalar_lea.vmem %s2734_s1, %s2432_s16  ;;  %s2816_s30 = scalar_lea.vmem %s2737_s4, %s2435_s25 }
  0x72   : > { %1741 = vmatprep.subr.bf16.mxu0 %v2166_v2  ;;  %1749 = vmatprep.subr.bf16.mxu1 %v2166_v2  ;;  %v2488_v4 = vld [vmem:[%s2477_s9] sm:$0xff]  ;;  %1230 = vst.msk [vmem:[#allocation4] sm:$0xff] %vm603_vm2, %v2166_v2  ;;  %s2168_s0 = smov 120   ;;  %s2169_s2 = smov 96   ;;  %vm662_vm4 = vcmask 64512   ;;  %v654_v23 = vlaneseq  ;;  %vm721_vm5 = vcmask 60416  }
  0x73   : > { %1742 = vmatpush3.bf16.msra.mxu0 %v1949_v1  ;;  %1745 = vmatprep.mubr.msk.bf16.mxu0 %vm2167_vm1, %v2166_v2  ;;  %v590_v5 = vpack.c.bf16 %v2488_v4, %v2488_v4  ;;  %s2170_s3 = smov 80   ;;  %s2171_s18 = smov 88   ;;  %v649_v25 = vld [vmem:[%s2815_s11] sm:$0x1]  ;;  %vm728_vm6 = vcmask 1043456   ;;  %vm892_vm7 = vcmask 130112  }
  0x74   : > { %1743 = vmatprep.subr.bf16.mxu0 %v2166_v2  ;;  %1751 = vmatprep.mubr.msk.bf16.mxu1 %vm2167_vm1, %v2166_v2  ;;  %s2172_s24 = smov 72   ;;  %s2173_s27 = smov 112   ;;  %v655_v24 = vshrl.u32 %v654_v23, 7  ;;  %v650_v26 = vmul.f32 -1e+09, %v649_v25  ;;  %vm1013_vm8 = vcmask 195712  }
  0x75   : > { %s2174_s12 = smov 104   ;;  %s2175_s15 = smov 56   ;;  %vm1134_vm9 = vcmask 261312   ;;  %vm1325_vm10 = vcmask 523264  }
  0x76   : > { %v656_v27 = vsub.s32 0, %v655_v24  ;;  %s2176_s16 = smov 64   ;;  %s2177_s20 = smov 40  }
  0x77   : > { %1744 = vmatpush3.bf16.msra.mxu0 %v1950_v3  ;;  %s2178_s26 = smov 48   ;;  %s2179_s8 = smov 8  }
  0x78   : > { %1755 = vmatprep.subr.bf16.mxu0 %v2166_v2  ;;  %v657_v28 = vrot.slane %v650_v26, %v656_v27  ;;  %s2180_s7 = smov 16   ;;  %s2181_s22 = smov 24  }
  0x79   : > { %s1439_s11 = sshll.u32 %s2479_s10, 4  ;;  %s2620_s11 = int_to_ptr.vmem [resolvable:$true] %s1439_s11 }
  0x7a   : > { %1746 = vmatmul.mubr.msk.bf16.vlgmr.msra.gmra.mrb[0].mxu0 %vm603_vm2, %v590_v5 }
  0x7b   : > { %1757 = vmatprep.mubr.msk.bf16.mxu0 %vm2167_vm1, %v2166_v2 }
 0x14d   : > { %v641_v6 = vpop.f32.mrb[0].mxu0 }
 0x14e   : > { %648 = vst.msk [vmem:[#allocation2] sm:$0xff] %vm647_vm3, %v641_v6  ;;  %v1747_v7 = vpop.f32.mrb[1].mxu0 }
 0x14f   : > { %v644_v8 = vpop.f32.mrb[2].mxu0 }
 0x150   : > { %v1748_v9 = vpop.f32.mrb[3].mxu0 }
 0x155   : > { %v773_v10 = vld [vmem:[#allocation2] sm:$0xff] }
 0x156   : > { %v2501_v11 = vpack.c.bf16 %v773_v10, %v773_v10 }
 0x158   : > { %776 = vrot.lane.b32.xlu1 %v2501_v11, %s2168_s0  ;;  %660 = vrot.lane.b32.xlu0 %v2501_v11, %s2169_s2 }
 0x15c   : > { %899 = vrot.lane.b32.xlu1 %v2501_v11, %s2170_s3  ;;  %778 = vrot.lane.b32.xlu0 %v2501_v11, %s2171_s18  ;;  %s2817_s3 = scalar_lea.vmem %s2738_s5, %s2435_s25  ;;  %s2818_s18 = sld [smem:[#allocation20_spill]] }
 0x160   : > { %1020 = vrot.lane.b32.xlu1 %v2501_v11, %s2172_s24  ;;  %897 = vrot.lane.b32.xlu0 %v2501_v11, %s2173_s27  ;;  %s2820_s24 = sld [smem:[#allocation30_spill]] }
 0x162   : > { %s1702_s27 = sshll.u32 %s2818_s18, 2 }
 0x164   : > { %1018 = vrot.lane.b32.xlu0 %v2501_v11, %s2174_s12  ;;  %s1703_s12 = sshll.u32 %s2147_s23, 3  ;;  %s2182_s23 = smov [#allocation9]  }
 0x165   : > { %s1436_s28 = sadd.s32 %s1703_s12, %s1702_s27 }
 0x166   : > { %s1704_s14 = sshll.u32 %s1436_s28, 6  ;;  %p2824_p13 = scmp.ne.s32.totalorder %s2820_s24, 0 }
 0x1ca   : > { %v661_v12 = vpop.permute.xlu0 %660  ;;  %v777_v15 = vpop.permute.xlu1 %776 }
 0x1cb   : > { %v667_v13 = vsel %vm662_vm4, %v661_v12, 0 }
 0x1cc   : > { %1750 = vmatpush3.bf16.xpose.msra.mxu1 %v667_v13 }
 0x1cd   : > { %1761 = vmatprep.subr.bf16.mxu1 %v2166_v2 }
 0x1ce   : > { %v779_v14 = vpop.permute.xlu0 %778  ;;  %v900_v17 = vpop.permute.xlu1 %899 }
 0x1cf   : > { %v784_v16 = vsel %vm662_vm4, %v779_v14, 0  ;;  %v905_v18 = vsel %vm662_vm4, %v900_v17, 0 }
 0x1d2   : > { %v1021_v19 = vpop.permute.xlu1 %1020  ;;  %v898_v20 = vpop.permute.xlu0 %897 }
 0x1d3   : > { %1752 = vmatmul.mubr.msk.bf16.vlgmr.msra.gmra.mrb[0].mxu1 %vm662_vm4, %v2501_v11  ;;  %v1026_v21 = vsel %vm662_vm4, %v1021_v19, 0 }
 0x1d4   : > { %1762 = vmatpush3.bf16.xpose.msra.mxu1 %v784_v16  ;;  %1763 = vmatprep.mubr.msk.bf16.mxu1 %vm2167_vm1, %v2166_v2 }
 0x1d5   : > { %1773 = vmatprep.subr.bf16.mxu1 %v2166_v2 }
 0x1d6   : > { %v1019_v22 = vpop.permute.xlu0 %1018 }
 0x1db   : > { %1764 = vmatmul.mubr.msk.bf16.vlgmr.msra.gmra.mrb[4].mxu1 %vm662_vm4, %v777_v15 }
 0x1dc   : > { %1774 = vmatpush3.bf16.xpose.msra.mxu1 %v905_v18  ;;  %1775 = vmatprep.mubr.msk.bf16.mxu1 %vm2167_vm1, %v2166_v2 }
 0x1dd   : > { %1785 = vmatprep.subr.bf16.mxu1 %v2166_v2 }
 0x1e3   : > { %1776 = vmatmul.mubr.msk.bf16.vlgmr.msra.gmra.mrb[8].mxu1 %vm662_vm4, %v898_v20 }
 0x1e4   : > { %1786 = vmatpush3.bf16.xpose.msra.mxu1 %v1026_v21  ;;  %1787 = vmatprep.mubr.msk.bf16.mxu1 %vm2167_vm1, %v2166_v2 }
 0x1e5   : > { %1797 = vmatprep.subr.bf16.mxu1 %v2166_v2 }
 0x1eb   : > { %1788 = vmatmul.mubr.msk.bf16.vlgmr.msra.gmra.mrb[12].mxu1 %vm662_vm4, %v1019_v22 }
 0x1ec   : > { %1801 = vmatprep.mubr.msk.bf16.mxu1 %vm2167_vm1, %v2166_v2 }
 0x2a6   : > { %v703_v29 = vpop.f32.mrb[0].mxu1 }
 0x2a7   : > { %v704_v30 = vadd.f32 %v703_v29, %v657_v28  ;;  %v1753_v31 = vpop.f32.mrb[1].mxu1 }
 0x2a8   : > { %v706_v32 = vpop.f32.mrb[2].mxu1 }
 0x2a9   : > { %v1754_v33 = vpop.f32.mrb[3].mxu1  ;;  %v709_v34 = vsel %vm662_vm4, %v704_v30, -inf }
 0x2aa   : > { %710 = vmax.xlane.f32.xlu1 %v709_v34 }
 0x2ae   : > { %v820_v35 = vpop.f32.mrb[4].mxu1 }
 0x2af   : > { %v821_v36 = vadd.f32 %v820_v35, %v657_v28  ;;  %v1765_v37 = vpop.f32.mrb[5].mxu1 }
 0x2b0   : > { %v823_v38 = vpop.f32.mrb[6].mxu1 }
 0x2b1   : > { %v1766_v39 = vpop.f32.mrb[7].mxu1  ;;  %v826_v40 = vsel %vm662_vm4, %v821_v36, -inf }
 0x2b2   : > { %827 = vmax.xlane.f32.xlu0 %v826_v40 }
 0x2b6   : > { %v941_v41 = vpop.f32.mrb[8].mxu1 }
 0x2b7   : > { %v942_v42 = vadd.f32 %v941_v41, %v657_v28  ;;  %v1777_v43 = vpop.f32.mrb[9].mxu1 }
 0x2b8   : > { %v944_v44 = vpop.f32.mrb[10].mxu1  ;;  %v1951_v43 = vld [vmem:[%s2452_s13] sm:$0xff]  }
 0x2b9   : > { %v1778_v45 = vpop.f32.mrb[11].mxu1  ;;  %v947_v46 = vsel %vm662_vm4, %v942_v42, -inf  ;;  %1798 = vmatpush3.bf16.msra.mxu1 %v1951_v43  ;;  %v1952_v44 = vld [vmem:[%s2452_s13 + $0x8] sm:$0xff]   ;;  %s2009_s13 = scalar_lea.vmem %s2620_s11, 256 }
 0x2ba   : > { %948 = vmax.xlane.f32.xlu0 %v947_v46  ;;  %1799 = vmatprep.subr.bf16.mxu1 %v2166_v2  ;;  %p2010_p6 = scmp.ne.s32.totalorder %s2620_s11, %s2009_s13 }
 0x2bc   : > { %p2011_p1 = pnand %p2010_p6, %p2824_p13 }
 0x2bd   : > { %1800 = vmatpush3.bf16.msra.mxu1 %v1952_v44 }
 0x2be   : > { %v1062_v47 = vpop.f32.mrb[12].mxu1  ;;  %1813 = vmatprep.subr.bf16.mxu1 %v2166_v2  ;;  %p2012_p12 = pneg %p2011_p1 }
 0x2bf   : > { %v1063_v48 = vadd.f32 %v1062_v47, %v657_v28  ;;  %v1789_v49 = vpop.f32.mrb[13].mxu1 }
 0x2c0   : > { %v1065_v50 = vpop.f32.mrb[14].mxu1 }
 0x2c1   : > { %v1790_v51 = vpop.f32.mrb[15].mxu1  ;;  %v1068_v52 = vsel %vm662_vm4, %v1063_v48, -inf }
 0x2c2   : > { %1069 = vmax.xlane.f32.xlu1 %v1068_v52 }
 0x337   : > { %v711_v53 = vpop.xlane.xlu1 %710 }
 0x338   : > { %v712_v54 = vsub.f32 %v704_v30, %v711_v53 }
 0x33a   : > { %v713_v55 = vmul.f32 1.442695, %v712_v54 }
 0x33c   : > { %1959 = vpow2.f32 %v713_v55 }
 0x33f   : > { %v828_v56 = vpop.xlane.xlu0 %827 }
 0x340   : > { %v829_v57 = vsub.f32 %v821_v36, %v828_v56 }
 0x342   : > { %v830_v58 = vmul.f32 1.442695, %v829_v57 }
 0x344   : > { %1961 = vpow2.f32 %v830_v58 }
 0x346   : > { %v1960_v59 = vpop.eup %1959 }
 0x347   : > { %v949_v60 = vpop.xlane.xlu0 %948  ;;  %v715_v61 = vsel %vm662_vm4, %v1960_v59, 0.0 }
 0x348   : > { %v950_v62 = vsub.f32 %v942_v42, %v949_v60  ;;  %716 = vadd.xlane.f32.xlu0 %v715_v61 }
 0x34a   : > { %v951_v63 = vmul.f32 1.442695, %v950_v62 }
 0x34c   : > { %1963 = vpow2.f32 %v951_v63 }
 0x34e   : > { %v1962_v0 = vpop.eup %1961 }
 0x34f   : > { %v832_v1 = vsel %vm662_vm4, %v1962_v0, 0.0  ;;  %v1070_v6 = vpop.xlane.xlu1 %1069 }
 0x350   : > { %833 = vadd.xlane.f32.xlu1 %v832_v1  ;;  %v1071_v7 = vsub.f32 %v1063_v48, %v1070_v6  ;;  %v1955_v6 = vld [vmem:[%s2471_s19] sm:$0xff]  }
 0x352   : > { %v1072_v8 = vmul.f32 1.442695, %v1071_v7  ;;  %v1957_v7 = vld [vmem:[%s2471_s19 + $0x10] sm:$0xff]  }
 0x354   : > { %1965 = vpow2.f32 %v1072_v8 }
 0x356   : > { %v1964_v3 = vpop.eup %1963 }
 0x357   : > { %v953_v5 = vsel %vm662_vm4, %v1964_v3, 0.0 }
 0x358   : > { %954 = vadd.xlane.f32.xlu0 %v953_v5  ;;  %v1954_v5 = vld [vmem:[%s2461_s29 + $0x8] sm:$0xff]  }
 0x35e   : > { %v1966_v9 = vpop.eup %1965 }
 0x35f   : > { %v1074_v10 = vsel %vm662_vm4, %v1966_v9, 0.0 }
 0x361   : > { %840 = vrot.lane.b32.xlu1 %v2501_v11, %s2175_s15 }
 0x36e   : > { %723 = vrot.lane.b32.xlu0 %v2501_v11, %s2176_s16 }
 0x372   : > { %1082 = vrot.lane.b32.xlu0 %v2501_v11, %s2177_s20 }
 0x385   : > { %1075 = vadd.xlane.f32.xlu1 %v1074_v10 }
 0x396   : > { %961 = vrot.lane.b32.xlu1 %v2501_v11, %s2178_s26  ;;  %s2821_s26 = sld [smem:[#allocation40_spill]] }
 0x3d5   : > { %v717_v12 = vpop.xlane.xlu0 %716 }
 0x3d6   : > { %1967 = vrcp.f32 %v717_v12 }
 0x3dd   : > { %v834_v13 = vpop.xlane.xlu1 %833 }
 0x3de   : > { %1969 = vrcp.f32 %v834_v13 }
 0x3e0   : > { %v1968_v14 = vpop.eup %1967 }
 0x3e1   : > { %v719_v15 = vmul.f32 %v1968_v14, %v1960_v59  ;;  %v841_v21 = vpop.permute.xlu1 %840 }
 0x3e2   : > { %v846_v23 = vsel %vm728_vm6, %v841_v21, 0 }
 0x3e3   : > { %v720_v16 = vpack.c.bf16 %v719_v15, %v719_v15 }
 0x3e5   : > { %v955_v17 = vpop.xlane.xlu0 %954  ;;  %722 = vst.msk [vmem:[%s2479_s10] sm:$0xf] %vm721_vm5, %v720_v16 }
 0x3e6   : > { %1971 = vrcp.f32 %v955_v17 }
 0x3e8   : > { %v1970_v18 = vpop.eup %1969 }
 0x3e9   : > { %v836_v19 = vmul.f32 %v1970_v18, %v1962_v0  ;;  %v724_v20 = vpop.permute.xlu0 %723  ;;  %v1687_v18 = vld [vmem:[%s2816_s30] ss:$0 sm:$0xff] }
 0x3ea   : > { %v730_v11 = vsel %vm728_vm6, %v724_v20, 0 }
 0x3eb   : > { %1756 = vmatpush3.bf16.msra.mxu0 %v730_v11  ;;  %v837_v22 = vpack.c.bf16 %v836_v19, %v836_v19 }
 0x3ec   : > { %1767 = vmatprep.subr.bf16.mxu0 %v2166_v2 }
 0x3ed   : > { %1676 = vst.msk [vmem:[%s2479_s10 + $0x4] sm:$0xf] %vm721_vm5, %v837_v22  ;;  %v1083_v30 = vpop.permute.xlu0 %1082 }
 0x3ee   : > { %1758 = vmatmul.mubr.msk.bf16.vlgmr.msra.gmra.mrb[4].mxu0 %vm662_vm4, %v720_v16  ;;  %v1088_v31 = vsel %vm728_vm6, %v1083_v30, 0 }
 0x3ef   : > { %1768 = vmatpush3.bf16.msra.mxu0 %v846_v23  ;;  %1769 = vmatprep.mubr.msk.bf16.mxu0 %vm2167_vm1, %v2166_v2 }
 0x3f0   : > { %v1972_v24 = vpop.eup %1971  ;;  %1779 = vmatprep.subr.bf16.mxu0 %v2166_v2 }
 0x3f1   : > { %v957_v25 = vmul.f32 %v1972_v24, %v1964_v3  ;;  %v1953_v3 = vld [vmem:[%s2461_s29] sm:$0xff]  }
 0x3f3   : > { %v958_v26 = vpack.c.bf16 %v957_v25, %v957_v25 }
 0x3f5   : > { %1679 = vst.msk [vmem:[%s2479_s10 + $0x8] sm:$0xf] %vm721_vm5, %v958_v26 }
 0x3f6   : > { %1770 = vmatmul.mubr.msk.bf16.vlgmr.msra.gmra.mrb[8].mxu0 %vm662_vm4, %v837_v22  ;;  %v1958_v22 = vld [vmem:[%s2471_s19 + $0x18] sm:$0xff]  }
 0x3f7   : > { %1781 = vmatprep.mubr.msk.bf16.mxu0 %vm2167_vm1, %v2166_v2 }
 0x412   : > { %v1076_v27 = vpop.xlane.xlu1 %1075 }
 0x413   : > { %1973 = vrcp.f32 %v1076_v27 }
 0x416   : > { %v962_v28 = vpop.permute.xlu1 %961 }
 0x417   : > { %v967_v29 = vsel %vm728_vm6, %v962_v28, 0 }
 0x418   : > { %1780 = vmatpush3.bf16.msra.mxu0 %v967_v29  ;;  %v1291_v29 = vld [vmem:[#allocation4] sm:$0xff] }
 0x419   : > { %1791 = vmatprep.subr.bf16.mxu0 %v2166_v2 }
 0x41b   : > { %1782 = vmatmul.mubr.msk.bf16.vlgmr.msra.gmra.mrb[12].mxu0 %vm662_vm4, %v958_v26 }
 0x41c   : > { %1792 = vmatpush3.bf16.msra.mxu0 %v1088_v31  ;;  %1793 = vmatprep.mubr.msk.bf16.mxu0 %vm2167_vm1, %v2166_v2 }
 0x41d   : > { %v1974_v32 = vpop.eup %1973  ;;  %1805 = vmatprep.subr.bf16.mxu0 %v2166_v2 }
 0x41e   : > { %v1078_v33 = vmul.f32 %v1974_v32, %v1966_v9 }
 0x420   : > { %v1079_v34 = vpack.c.bf16 %v1078_v33, %v1078_v33 }
 0x422   : > { %1682 = vst.msk [vmem:[%s2479_s10 + $0xc] sm:$0xf] %vm721_vm5, %v1079_v34  ;;  %s2013_s10 = sshll.u32 %s2182_s23, 4  ;;  %s2014_s10 = int_to_ptr.vmem [resolvable:$false] %s2013_s10 }
 0x423   : > { %1794 = vmatmul.mubr.msk.bf16.vlgmr.msra.gmra.mrb[16].mxu0 %vm662_vm4, %v1079_v34  ;;  %s2015_s30 = scalar_lea.vmem %s2014_s10, 512  ;;  %p2016_p0 = scmp.lt.s32.totalorder %s2620_s11, %s2014_s10 }
 0x424   : > { %1809 = vmatprep.mubr.msk.bf16.mxu0 %vm2167_vm1, %v2166_v2  ;;  %1806 = vmatpush3.bf16.msra.mxu0 %v1953_v3  ;;  %p2017_p3 = scmp.lt.s32.totalorder %s2015_s30, %s2009_s13 }
 0x425   : > { %1807 = vmatprep.subr.bf16.mxu0 %v2166_v2 }
 0x426   : > { %p2018_p5 = por %p2017_p3, %p2016_p0 }
 0x428   : > { %1808 = vmatpush3.bf16.msra.mxu0 %v1954_v5  ;;  %p2019_p7 = pnand %p2018_p5, %p2012_p12 }
 0x4c1   : > { %v766_v35 = vpop.f32.mrb[4].mxu0 }
 0x4c2   : > { %772 = vst.msk [vmem:[#allocation3] sm:$0xff] %vm662_vm4, %v766_v35  ;;  %v1759_v36 = vpop.f32.mrb[5].mxu0 }
 0x4c3   : > { %v769_v37 = vpop.f32.mrb[6].mxu0 }
 0x4c4   : > { %v1760_v38 = vpop.f32.mrb[7].mxu0 }
 0x4c9   : > { %v882_v39 = vpop.f32.mrb[8].mxu0 }
 0x4ca   : > { %889 = vrot.lane.b32.xlu1 %v882_v39, %s2179_s8  ;;  %v1771_v40 = vpop.f32.mrb[9].mxu0  ;;  %s2822_s8 = smov %s2821_s26 }
 0x4cb   : > { %v885_v41 = vpop.f32.mrb[10].mxu0 }
 0x4cc   : > { %v1772_v42 = vpop.f32.mrb[11].mxu0 }
 0x4ee   : > { %v1003_v45 = vpop.f32.mrb[12].mxu0 }
 0x4ef   : > { %1010 = vrot.lane.b32.xlu0 %v1003_v45, %s2180_s7  ;;  %v1783_v46 = vpop.f32.mrb[13].mxu0  ;;  %s2618_s7 = scalar_lea.hbm %s2821_s26, %s1704_s14 }
 0x4f0   : > { %v1006_v47 = vpop.f32.mrb[14].mxu0 }
 0x4f1   : > { %v1784_v48 = vpop.f32.mrb[15].mxu0 }
 0x4f6   : > { %v1124_v49 = vpop.f32.mrb[16].mxu0 }
 0x4f7   : > { %1131 = vrot.lane.b32.xlu1 %v1124_v49, %s2181_s22  ;;  %v1795_v50 = vpop.f32.mrb[17].mxu0 }
 0x4f8   : > { %v1127_v51 = vpop.f32.mrb[18].mxu0 }
 0x4f9   : > { %v1796_v52 = vpop.f32.mrb[19].mxu0 }
 0x53c   : > { %v890_v53 = vpop.permute.xlu1 %889 }
 0x53d   : > { %893 = vst.msk [vmem:[#allocation3] sm:$0xff] %vm892_vm7, %v890_v53 }
 0x561   : > { %v1011_v54 = vpop.permute.xlu0 %1010 }
 0x562   : > { %1014 = vst.msk [vmem:[#allocation3] sm:$0xff] %vm1013_vm8, %v1011_v54 }
 0x569   : > { %v1132_v55 = vpop.permute.xlu1 %1131 }
 0x56a   : > { %1135 = vst.msk [vmem:[#allocation3] sm:$0xff] %vm1134_vm9, %v1132_v55 }
 0x571   : > { %v1136_v56 = vld [vmem:[#allocation3] sm:$0xff] }
 0x572   : > { %v1141_v57 = vpack.c.bf16 %v1136_v56, %v1136_v56 }
 0x574   : > { %1802 = vmatmul.mubr.msk.bf16.vlgmr.msra.gmra.mrb[16].mxu1 %vm603_vm2, %v1141_v57 }
 0x575   : > { %1821 = vmatprep.mubr.msk.bf16.mxu1 %vm2167_vm1, %v2166_v2  ;;  %1814 = vmatpush3.bf16.msra.mxu1 %v1955_v6 }
 0x576   : > { %1815 = vmatprep.subr.bf16.mxu1 %v2166_v2 }
 0x647   : > { %v1191_v58 = vpop.f32.mrb[16].mxu1 }
 0x648   : > { %v1192_v59 = vadd.f32 %v1191_v58, %v2488_v4  ;;  %v1803_v60 = vpop.f32.mrb[17].mxu1  ;;  %v1956_v4 = vld [vmem:[%s2471_s19 + $0x8] sm:$0xff]   ;;  %s2819_s19 = sld [smem:[#allocation15_spill]] }
 0x649   : > { %v1194_v61 = vpop.f32.mrb[18].mxu1  ;;  %1816 = vmatpush3.bf16.msra.mxu1 %v1956_v4 }
 0x64a   : > { %v1804_v62 = vpop.f32.mrb[19].mxu1  ;;  %v1199_v63 = vsel %vm603_vm2, %v1192_v59, 0.0  ;;  %v1204_v0 = vmul.f32 %v1192_v59, %v1192_v59  ;;  %1817 = vmatprep.subr.bf16.mxu1 %v2166_v2 }
 0x64b   : > { %1200 = vadd.xlane.f32.xlu0 %v1199_v63 }
 0x64c   : > { %v1205_v1 = vsel %vm603_vm2, %v1204_v0, 0.0 }
 0x64d   : > { %1206 = vadd.xlane.f32.xlu1 %v1205_v1  ;;  %1818 = vmatpush3.bf16.msra.mxu1 %v1957_v7 }
 0x64e   : > { %1819 = vmatprep.subr.bf16.mxu1 %v2166_v2  ;;  %v1688_v2 = vld [vmem:[%s2817_s3] ss:$0 sm:$0xff]  ;;  %s2823_s22 = sand.u32 1, %s2819_s19  }
 0x64f   : > { %s2624_s29 = scalar_lea.sflag [#allocation10], %s2823_s22 }
 0x651   : > { %1820 = vmatpush3.bf16.msra.mxu1 %v1958_v22 }
 0x6d8   : > { %v1201_v8 = vpop.xlane.xlu0 %1200 }
 0x6d9   : > { %v1203_v9 = vmul.f32 0.03125, %v1201_v8 }
 0x6da   : > { %v1207_v10 = vpop.xlane.xlu1 %1206 }
 0x6db   : > { %v1209_v12 = vmul.f32 %v1203_v9, %v1203_v9  ;;  %v1208_v13 = vmul.f32 0.03125, %v1207_v10  ;;  %v1211_v16 = vsub.f32 %v1192_v59, %v1203_v9 }
 0x6dd   : > { %v1210_v14 = vsub.f32 %v1208_v13, %v1209_v12 }
 0x6df   : > { %v1212_v15 = vadd.f32 1e-05, %v1210_v14 }
 0x6e1   : > { %1975 = vrsqrt.f32 %v1212_v15 }
 0x6eb   : > { %v1976_v17 = vpop.eup %1975 }
 0x6ec   : > { %v1214_v19 = vmul.f32 %v1976_v17, %v1211_v16 }
 0x6ee   : > { %v1221_v20 = vmul.f32 %v1687_v18, %v1214_v19 }
 0x6f0   : > { %v1228_v11 = vadd.f32 %v1688_v2, %v1221_v20 }
 0x6f2   : > { %v1229_v21 = vpack.c.bf16 %v1228_v11, %v1228_v11 }
 0x6f4   : > { %1810 = vmatmul.mubr.msk.bf16.vlgmr.msra.gmra.mrb[20].mxu0 %vm603_vm2, %v1229_v21 }
 0x7c7   : > { %v1284_v23 = vpop.f32.mrb[20].mxu0 }
 0x7c8   : > { %v1290_v24 = vmax.f32 %v1284_v23, 0.0  ;;  %v1811_v25 = vpop.f32.mrb[21].mxu0 }
 0x7c9   : > { %v1287_v26 = vpop.f32.mrb[22].mxu0 }
 0x7ca   : > { %v1292_v27 = vpack.c.bf16 %v1290_v24, %v1290_v24  ;;  %v1812_v28 = vpop.f32.mrb[23].mxu0 }
 0x7cc   : > { %1822 = vmatmul.mubr.msk.bf16.vlgmr.msra.gmra.mrb[20].mxu1 %vm1325_vm10, %v1292_v27 }
 0x89f   : > { %v1363_v30 = vpop.f32.mrb[20].mxu1 }
 0x8a0   : > { %v1369_v31 = vadd.f32 %v1363_v30, %v1291_v29  ;;  %v1823_v32 = vpop.f32.mrb[21].mxu1 }
 0x8a1   : > { %v1366_v33 = vpop.f32.mrb[22].mxu1 }
 0x8a2   : > { %1370 = vst.msk [vmem:[#allocation4] sm:$0xff] %vm603_vm2, %v1369_v31  ;;  %v1824_v34 = vpop.f32.mrb[23].mxu1 }
 0x8a9   : > { %v1371_v35 = vld [vmem:[#allocation4] sm:$0xff] }
 0x8aa   : > { %v1372_v36 = vadd.f32 %v1371_v35, %v1228_v11 }
 0x8ac   : > { %v1375_v37 = vsel %vm603_vm2, %v1372_v36, 0.0  ;;  %v1379_v38 = vmul.f32 %v1372_v36, %v1372_v36 }
 0x8ad   : > { %1376 = vadd.xlane.f32.xlu0 %v1375_v37 }
 0x8ae   : > { %v1380_v39 = vsel %vm603_vm2, %v1379_v38, 0.0 }
 0x8b1   : > { %1381 = vadd.xlane.f32.xlu0 %v1380_v39 }
 0x8b2   : > { %2022 = shalt.err (!%p2019_p7)
}
 0x8b3   : > { %s2023_s0 = scalar_lea.hbm %s2618_s7, 256  ;;  %s2027_s19 = scalar_lea.hbm %s2822_s8, 1024 }
 0x8b4   : > { %p2024_p11 = scmp.ne.s32.totalorder %s2618_s7, %s2023_s0  ;;  %p2028_p10 = scmp.lt.u32.totalorder %s2618_s7, %s2822_s8 }
 0x8b5   : > { %p2029_p2 = scmp.lt.u32.totalorder %s2027_s19, %s2023_s0  ;;  %p2031_p6 = scmp.lt.u32.totalorder %s2023_s0, %s2618_s7 }
 0x8b6   : > { %p2025_p4 = pnand %p2024_p11, %p2824_p13 }
 0x8b7   : > { %p2030_p9 = por %p2029_p2, %p2028_p10 }
 0x8b8   : > { %p2026_p8 = pneg %p2025_p4 }
 0x8b9   : > { %p2032_p1 = por %p2031_p6, %p2030_p9 }
 0x8bb   : > { %p2033_p12 = pnand %p2032_p1, %p2026_p8 }
 0x8bd   : > { %2036 = shalt.err (!%p2033_p12)
}
 0x8be   : > { %s2183_s28 = smov 4   ;;  %s2825_s14 = sld [smem:[#allocation32_spill]]  ;;  %v1697_v49 = vld [vmem:[%s573_s21] ss:$0 sm:$0xff] }
 0x8bf   : > { %1828 = dma.vmem_to_hbm [thread:$0]  (%p2824_p13), %s2620_s11, 256, %s2618_s7, %s2624_s29, %s2176_s16, %s2176_s16, %s2183_s28  }
 0x8c0   : > { %s2826_s24 = sld [smem:[#allocation26_spill]]  ;;  %v1698_v51 = vld [vmem:[%s576_s17] ss:$0 sm:$0xff]  ;;  %s1701_s22 = sshll.u32 %s2818_s18, 7 }
 0x8c1   : > { %s1424_s29 = sshll.u32 %s2477_s9, 4  ;;  %s2829_s10 = sld [smem:[#allocation39_spill]]  ;;  %s2667_s29 = int_to_ptr.vmem [resolvable:$true] %s1424_s29 }
 0x8c2   : > { %s2037_s0 = scalar_lea.vmem %s2667_s29, 128  ;;  %s2184_s25 = smov [#allocation8]  }
 0x8c3   : > { %p2038_p13 = scmp.ne.s32.totalorder %s2667_s29, %s2037_s0  ;;  %s2041_s17 = sshll.u32 %s2184_s25, 4  ;;  %s2042_s17 = int_to_ptr.vmem [resolvable:$false] %s2041_s17 }
 0x8c4   : > { %s1406_s21 = scalar_lea.sflag [#allocation7], %s2825_s14  ;;  %s2043_s18 = scalar_lea.vmem %s2042_s17, 256 }
 0x8c5   : > { %p2044_p7 = scmp.lt.s32.totalorder %s2667_s29, %s2042_s17  ;;  %p2045_p11 = scmp.lt.s32.totalorder %s2043_s18, %s2037_s0 }
 0x8c6   : > { %p2830_p0 = scmp.ne.s32.totalorder %s2826_s24, 0 }
 0x8c7   : > { %s2665_s30 = scalar_lea.hbm %s2829_s10, %s1701_s22  ;;  %p2046_p4 = por %p2045_p11, %p2044_p7 }
 0x8c8   : > { %p2039_p3 = pnand %p2038_p13, %p2830_p0 }
 0x8ca   : > { %p2040_p5 = pneg %p2039_p3 }
 0x8cc   : > { %p2047_p8 = pnand %p2046_p4, %p2040_p5 }
 0x93a   : > { %v1377_v40 = vpop.xlane.xlu0 %1376 }
 0x93b   : > { %v1378_v41 = vmul.f32 0.03125, %v1377_v40 }
 0x93d   : > { %v1384_v43 = vmul.f32 %v1378_v41, %v1378_v41  ;;  %v1386_v47 = vsub.f32 %v1372_v36, %v1378_v41 }
 0x93e   : > { %v1382_v42 = vpop.xlane.xlu0 %1381 }
 0x93f   : > { %v1383_v44 = vmul.f32 0.03125, %v1382_v42 }
 0x941   : > { %v1385_v45 = vsub.f32 %v1383_v44, %v1384_v43 }
 0x943   : > { %v1387_v46 = vadd.f32 1e-05, %v1385_v45 }
 0x945   : > { %1977 = vrsqrt.f32 %v1387_v46 }
 0x94f   : > { %v1978_v48 = vpop.eup %1977 }
 0x950   : > { %v1389_v50 = vmul.f32 %v1978_v48, %v1386_v47 }
 0x952   : > { %v1396_v52 = vmul.f32 %v1697_v49, %v1389_v50 }
 0x954   : > { %v1403_v53 = vadd.f32 %v1698_v51, %v1396_v52 }
 0x956   : > { %1404 = vst.msk [vmem:[%s2477_s9] sm:$0xff] %vm603_vm2, %v1403_v53 }
 0x957   : > { %2050 = shalt.err (!%p2047_p8)
}
 0x958   : > { %s2051_s9 = scalar_lea.hbm %s2665_s30, 128  ;;  %s2055_s19 = scalar_lea.hbm %s2829_s10, 256 }
 0x959   : > { %p2052_p10 = scmp.ne.s32.totalorder %s2665_s30, %s2051_s9  ;;  %p2056_p6 = scmp.lt.u32.totalorder %s2665_s30, %s2829_s10 }
 0x95a   : > { %p2057_p1 = scmp.lt.u32.totalorder %s2055_s19, %s2051_s9  ;;  %p2059_p13 = scmp.lt.u32.totalorder %s2051_s9, %s2665_s30 }
 0x95b   : > { %p2053_p2 = pnand %p2052_p10, %p2830_p0 }
 0x95c   : > { %p2058_p12 = por %p2057_p1, %p2056_p6 }
 0x95d   : > { %p2054_p9 = pneg %p2053_p2 }
 0x95e   : > { %p2060_p3 = por %p2059_p13, %p2058_p12 }
 0x960   : > { %p2061_p5 = pnand %p2060_p3, %p2054_p9 }
 0x962   : > { %2064 = shalt.err (!%p2061_p5)
}
 0x963   : > { %1827 = dma.vmem_to_hbm [thread:$0]  (%p2830_p0), %s2667_s29, 128, %s2665_s30, %s1406_s21  }
 0x964 PF: > { %s2831_s28 = sld [smem:[#allocation23_spill]]  ;;  %s2832_s14 = sld [smem:[#allocation17_spill]] }
 0x965   : > { %s2833_s15 = sld [smem:[#allocation27_spill]] }
 0x96a   : > { %p1843_p7 = scmp.ge.s32.totalorder %s2831_s28, 2  ;;  %s1454_s20 = sand.u32 1, %s2832_s14  }
 0x96b   : > { %p2834_p11 = scmp.ne.s32.totalorder %s2833_s15, 0  ;;  %s1455_s26 = scalar_lea.sflag [#allocation7], %s1454_s20 }
 0x96d   : > { %p1836_p4 = pnand %p1843_p7, %p2834_p11 }
 0x96f   : > { %2114 = dma.done.wait (!%p1836_p4), %s1455_s26, 128  }
 0x970   : > { %2116 = vsyncadd (!%p1836_p4), %s1455_s26, 4294967168  ;;  %s2835_s16 = sld [smem:[#allocation14_spill]]  ;;  %s2836_s11 = sld [smem:[#allocation31_spill]] }
 0x976   : > { %s1463_s7 = sand.u32 1, %s2835_s16   ;;  %p2837_p8 = scmp.ne.s32.totalorder %s2836_s11, 0 }
 0x977   : > { %s1464_s24 = scalar_lea.sflag [#allocation10], %s1463_s7 }
 0x978   : > { %p1839_p10 = pnand %p1843_p7, %p2837_p8 }
 0x97a   : > { %2118 = dma.done.wait (!%p1839_p10), %s1464_s24, 256  }
 0x97b   : > { %2120 = vsyncadd (!%p1839_p10), %s1464_s24, 4294967040  ;;  %s31_s27 = sadd.s32 1, %s2831_s28   ;;  %s2838_s17 = sld [smem:[#allocation15_spill]] }
 0x97c   : > { %p28_p0 = scmp.ge.s32.totalorder %s31_s27, 6   ;;  %s2839_s18 = sld [smem:[#allocation16_spill]] }
 0x97d   : > { %s2840_s19 = sld [smem:[#allocation29_spill]]  ;;  %s2841_s20 = sld [smem:[#allocation18_spill]] }
 0x97e   : > { %s2842_s21 = sld [smem:[#allocation19_spill]]  ;;  %s2843_s22 = sld [smem:[#allocation28_spill]] }
 0x97f   : > { %s2844_s23 = sld [smem:[#allocation21_spill]]  ;;  %s2845_s24 = sld [smem:[#allocation22_spill]] }
 0x980   : > { %s2846_s25 = sld [smem:[#allocation24_spill]]  ;;  %s2847_s26 = sld [smem:[#allocation25_spill]] }
 0x981   :  { %30 = sbr.rel (!%p28_p0) target bundleno = 20 (0x14), region = 156 }
 0x988   :  { %1469 = vsyncpa [#allocation6], 1 }
 0x989   :  { %1471 = vsyncpa [#allocation6 + $0x1], 1 }
 0x98a   :  { %1472 = vsyncpa [#allocation7], 1 }
 0x98b   :  { %1474 = vsyncpa [#allocation7 + $0x1], 1 }
 0x98c   :  { %1475 = vsyncpa [#allocation10], 1 }
 0x98d   :  { %1477 = vsyncpa [#allocation10 + $0x1], 1 }

</bundles_post_ra>
